<compile_context>
chip_gen: v5e
topology: v5e:2x2
jax: 0.10.0
libtpu: 0.0.40
codegen_flags: <defaults>
</compile_context>

<pallas_src>
import jax
import jax.numpy as jnp
from jax import lax
from jax.experimental import pallas as pl
from jax.experimental.pallas import tpu as pltpu

# --- dims consistent with CornerHeadV2 defaults -----------------------------
N_ROI      = 8                   # number of per-corner ROI features (% 4 == 0)
C_IN, H, W = 4, 8, 8             # input_shape (channels, height, width)
CONV_DIM   = 64                  # conv_dims = [64]
KH, KW     = 3, 3
OH, OW     = H - 2, W - 2        # 3x3 conv, padding=0
P          = OH * OW             # 36 output positions per ROI
K9         = C_IN * KH * KW      # 36 patch features per position
FC1, FC2   = 128, 64             # fc_dims = [128, 64]
NUM_POINTS = 1                   # PointsPredictor(num_points=1)

SMEM_FULL = pl.BlockSpec(memory_space=pltpu.MemorySpace.SMEM)


# ------------------------------ Pallas kernel -------------------------------
def corner_head_kernel(xp_ref, th_ref, norm_ref, wconv_ref, small_ref,
                       w1_ref, w2_ref, out_ref, hbuf_ref):
    """Fused conv3x3+ReLU -> fc1+ReLU -> fc2+ReLU -> head -> clamp -> affine.

    xp:    [P*BM, K9]   bf16  patch slab, rows ordered (p-major, roi-minor)
    th:    [BM, 6]      f32   thetas flattened row-major ([2,3] per ROI)
    norm:  [1]          f32   scalar (SMEM)
    wconv: [K9, D]      bf16  3x3 conv weight, feature order (c, ki, kj)
    small: [8, 128]     f32   r0=b1, r1=b2, r2=b_conv, r3=[bp_x,bp_y],
                              r4=wp[:,0], r5=wp[:,1]
    w1:    [P*D, 128]   bf16  fc1 weight permuted to position-major columns
    w2:    [128, 64]    bf16
    out:   [BM, 2]      f32
    hbuf:  [BM, P*D]    f32   VMEM scratch (conv output in fc1 column order)
    """
    bm = out_ref.shape[0]

    # conv as a single patches matmul + bias + ReLU  -> [P*bm, D] f32
    h0 = jnp.dot(xp_ref[...], wconv_ref[...], preferred_element_type=jnp.float32)
    h0 = jnp.maximum(h0 + small_ref[2:3, 0:CONV_DIM], 0.0)

    # Lay conv output down in (p-major, d-minor) column order so fc1 is one
    # dense matmul (static slices only; no in-kernel reshape).
    for p in range(P):
        hbuf_ref[:, p * CONV_DIM:(p + 1) * CONV_DIM] = h0[p * bm:(p + 1) * bm, :]

    # fc1 + ReLU
    h1 = jnp.dot(hbuf_ref[...].astype(jnp.bfloat16), w1_ref[...],
                 preferred_element_type=jnp.float32)
    h1 = jnp.maximum(h1 + small_ref[0:1, 0:FC1], 0.0)                 # [bm, 128]

    # fc2 + ReLU
    h2 = jnp.dot(h1.astype(jnp.bfloat16), w2_ref[...],
                 preferred_element_type=jnp.float32)
    h2 = jnp.maximum(h2 + small_ref[1:2, 0:FC2], 0.0)                 # [bm, 64]

    # corner_pred: tiny [64 -> 2] head on the VPU (mul + lane reduce), f32
    dx = jnp.sum(h2 * small_ref[4:5, 0:FC2], axis=-1, keepdims=True) + small_ref[3:4, 0:1]
    dy = jnp.sum(h2 * small_ref[5:6, 0:FC2], axis=-1, keepdims=True) + small_ref[3:4, 1:2]
    dx = jnp.clip(dx, -2.0, 2.0)
    dy = jnp.clip(dy, -2.0, 2.0)

    # corners = (theta @ [dx, dy, 1]^T + 1.0) * (norm_factor * 0.5)
    t = th_ref[...]
    scale = norm_ref[0] * 0.5
    out_ref[:, 0:1] = (t[:, 0:1] * dx + t[:, 1:2] * dy + t[:, 2:3] + 1.0) * scale
    out_ref[:, 1:2] = (t[:, 3:4] * dx + t[:, 4:5] * dy + t[:, 5:6] + 1.0) * scale


# ------------------------------ init / packing ------------------------------
def init_raw_params(key):
    """Raw (torch-layout) f32 parameters, inits mirroring CornerHeadV2."""
    ks = jax.random.split(key, 4)
    w_conv = jax.random.normal(ks[0], (CONV_DIM, C_IN, KH, KW), jnp.float32) \
             * (2.0 / (CONV_DIM * KH * KW)) ** 0.5          # c2_msra_fill-style
    b_conv = jnp.zeros((CONV_DIM,), jnp.float32)
    w1 = jax.random.normal(ks[1], (CONV_DIM * P, FC1), jnp.float32) \
         * (1.0 / (CONV_DIM * P)) ** 0.5
    b1 = jnp.zeros((FC1,), jnp.float32)
    w2 = jax.random.normal(ks[2], (FC1, FC2), jnp.float32) * (1.0 / FC1) ** 0.5
    b2 = jnp.zeros((FC2,), jnp.float32)
    wp = jax.random.normal(ks[3], (FC2, NUM_POINTS * 2), jnp.float32) * 2e-4
    bp = jnp.zeros((NUM_POINTS * 2,), jnp.float32)
    return dict(w_conv=w_conv, b_conv=b_conv, w1=w1, b1=b1, w2=w2, b2=b2,
                wp=wp, bp=bp)


def pack_params(raw):
    """One-time repack of raw params into kernel operands."""
    # conv weight [D, C, 3, 3] -> [K9, D], feature order k = c*9 + ki*3 + kj
    wconv = raw["w_conv"].reshape(CONV_DIM, K9).T.astype(jnp.bfloat16)
    # fc1 weight rows are torch-flatten order d*P + p; permute to p*D + d so it
    # composes with the kernel's (position-major) conv-output columns.
    w1p = (raw["w1"].reshape(CONV_DIM, P, FC1).transpose(1, 0, 2)
           .reshape(P * CONV_DIM, FC1).astype(jnp.bfloat16))
    w2 = raw["w2"].astype(jnp.bfloat16)
    # Small operands packed into one lane-dense f32 slab (one DMA descriptor).
    small = jnp.zeros((8, 128), jnp.float32)
    small = small.at[0, 0:FC1].set(raw["b1"])
    small = small.at[1, 0:FC2].set(raw["b2"])
    small = small.at[2, 0:CONV_DIM].set(raw["b_conv"])
    small = small.at[3, 0:2].set(raw["bp"])
    small = small.at[4, 0:FC2].set(raw["wp"][:, 0])
    small = small.at[5, 0:FC2].set(raw["wp"][:, 1])
    return dict(wconv=wconv, w1p=w1p, w2=w2, small=small)


# --------------------------------- wrapper ----------------------------------
def _pick_block_m(n_pad):
    for bm in (256, 128, 64, 32, 16, 8):
        if n_pad % bm == 0:
            return bm
    return 8


@jax.jit
def corner_head_v2_forward(corner_features, thetas, norm_factor, packed):
    n = corner_features.shape[0]
    assert n % 4 == 0, "corners are consumed as groups of 4 per marker"

    x = corner_features.reshape(n, C_IN, H, W).astype(jnp.float32)
    th = thetas.reshape(n, 2 * 3).astype(jnp.float32)   # native row-major [2,3]

    n_pad = ((n + 7) // 8) * 8
    if n_pad != n:
        x = jnp.pad(x, ((0, n_pad - n), (0, 0), (0, 0), (0, 0)))
        th = jnp.pad(th, ((0, n_pad - n), (0, 0)))
    bm = _pick_block_m(n_pad)
    nb = n_pad // bm

    # 3x3 / pad=0 patches, feature order (c, ki, kj).  Rows are grouped
    # block-major then p-major so each grid block sees a contiguous
    # [P*bm, K9] slab whose row p*bm + m is (position p, roi m-of-block).
    taps = [x[:, :, ki:ki + OH, kj:kj + OW] for ki in range(KH) for kj in range(KW)]
    pat = jnp.stack(taps, axis=2)                        # [n_pad, C, 9, OH, OW]
    pat = pat.reshape(n_pad, K9, P).transpose(0, 2, 1)   # [n_pad, P, K9]
    pat = (pat.reshape(nb, bm, P, K9).transpose(0, 2, 1, 3)
              .reshape(nb * P * bm, K9).astype(jnp.bfloat16))

    norm = jnp.asarray(norm_factor, jnp.float32).reshape(1)

    out = pl.pallas_call(
        corner_head_kernel,
        out_shape=jax.ShapeDtypeStruct((n_pad, 2), jnp.float32),
        grid=(nb,),
        in_specs=[
            pl.BlockSpec((P * bm, K9), lambda i: (i, 0)),          # patches (row-blocked)
            pl.BlockSpec((bm, 6), lambda i: (i, 0)),               # thetas  (row-blocked)
            SMEM_FULL,                                             # norm scalar
            pl.BlockSpec((K9, CONV_DIM), lambda i: (0, 0)),        # conv weight (resident)
            pl.BlockSpec((8, 128), lambda i: (0, 0)),              # packed biases / head
            pl.BlockSpec((P * CONV_DIM, FC1), lambda i: (0, 0)),   # fc1 weight (resident)
            pl.BlockSpec((FC1, FC2), lambda i: (0, 0)),            # fc2 weight (resident)
        ],
        out_specs=pl.BlockSpec((bm, 2), lambda i: (i, 0)),
        scratch_shapes=[pltpu.VMEM((bm, P * CONV_DIM), jnp.float32)],
        compiler_params=pltpu.CompilerParams(
            dimension_semantics=("parallel",)),
    )(pat, th, norm, packed["wconv"], packed["small"], packed["w1p"], packed["w2"])

    # corners.view(-1, 4, 2)
    # TODO(synk): splitting into per-Instances corner_batches is Python-side
    # list bookkeeping on proposal lengths, not kernel work; omitted here.
    return out[:n].reshape(-1, 4, 2)


# ------------------------------- reference ----------------------------------
def reference_forward(corner_features, thetas, norm_factor, raw):
    """Pure-JAX reference (torch layouts / conv), numerics matched to the
    kernel: bf16-rounded matmul operands, f32 accumulation everywhere."""
    n = corner_features.shape[0]
    f32 = jnp.float32
    q = lambda a: a.astype(jnp.bfloat16).astype(f32)
    hp = lax.Precision.HIGHEST

    x = corner_features.astype(f32)
    h = lax.conv_general_dilated(q(x), q(raw["w_conv"]), (1, 1), "VALID",
                                 dimension_numbers=("NCHW", "OIHW", "NCHW"),
                                 precision=hp)
    h = jnp.maximum(h + raw["b_conv"].reshape(1, -1, 1, 1), 0.0)
    h = h.reshape(n, CONV_DIM * P)                                   # torch flatten
    h = jnp.maximum(jnp.dot(q(h), q(raw["w1"]), precision=hp) + raw["b1"], 0.0)
    h = jnp.maximum(jnp.dot(q(h), q(raw["w2"]), precision=hp) + raw["b2"], 0.0)
    d = jnp.clip(jnp.dot(h, raw["wp"], precision=hp) + raw["bp"], -2.0, 2.0)
    th = thetas.reshape(n, 2, 3).astype(f32)
    ox = th[:, 0, 0] * d[:, 0] + th[:, 0, 1] * d[:, 1] + th[:, 0, 2]
    oy = th[:, 1, 0] * d[:, 0] + th[:, 1, 1] * d[:, 1] + th[:, 1, 2]
    out = (jnp.stack([ox, oy], axis=-1) + 1.0) * (norm_factor * 0.5)
    return out.reshape(-1, 4, 2)


if __name__ == "__main__":
    key = jax.random.PRNGKey(0)
    k_feat, k_theta, k_param = jax.random.split(key, 3)

    corner_features = jax.random.normal(k_feat, (N_ROI, C_IN, H, W), jnp.float32)
    thetas = jax.random.normal(k_theta, (N_ROI, 2, 3), jnp.float32) * 0.1
    norm_factor = 32.0

    raw = init_raw_params(k_param)
    packed = pack_params(raw)

    out = corner_head_v2_forward(corner_features, thetas, norm_factor, packed)
    jax.block_until_ready(out)

    ref = reference_forward(corner_features, thetas, norm_factor, raw)
    assert out.shape == (N_ROI // 4, 4, 2)
    assert bool(jnp.all(jnp.isfinite(out)))
    err = float(jnp.max(jnp.abs(out - ref)))
    assert bool(jnp.allclose(out, ref, atol=2e-3, rtol=2e-3)), f"max abs err {err}"
    print("KERNEL_OK")
</pallas_src>

<mosaic_0001>
module attributes {stable_mosaic.version = 11 : i64} {
  func.func @corner_head_kernel(%arg0: i32, %arg1: memref<288x36xbf16, #tpu.memory_space<vmem>>, %arg2: memref<8x6xf32, #tpu.memory_space<vmem>>, %arg3: memref<1xf32, #tpu.memory_space<smem>>, %arg4: memref<36x64xbf16, #tpu.memory_space<vmem>>, %arg5: memref<8x128xf32, #tpu.memory_space<vmem>>, %arg6: memref<2304x128xbf16, #tpu.memory_space<vmem>>, %arg7: memref<128x64xbf16, #tpu.memory_space<vmem>>, %arg8: memref<8x2xf32, #tpu.memory_space<vmem>>, %arg9: memref<8x2304xf32, #tpu.memory_space<vmem>>) attributes {dimension_semantics = [#tpu.dimension_semantics<parallel>], iteration_bounds = array<i64: 1>, scalar_prefetch = 0 : i64, scratch_operands = 1 : i64, tpu.core_type = #tpu.core_type<tc>, window_params = [{transform_indices = @transform_0, window_bounds = array<i64: 288, 36>}, {transform_indices = @transform_1, window_bounds = array<i64: 8, 6>}, {transform_indices = @transform_2, window_bounds = array<i64: 1>}, {pipeline_mode = #tpu.pipeline_mode<synchronous>, transform_indices = @transform_3, window_bounds = array<i64: 36, 64>}, {pipeline_mode = #tpu.pipeline_mode<synchronous>, transform_indices = @transform_4, window_bounds = array<i64: 8, 128>}, {pipeline_mode = #tpu.pipeline_mode<synchronous>, transform_indices = @transform_5, window_bounds = array<i64: 2304, 128>}, {pipeline_mode = #tpu.pipeline_mode<synchronous>, transform_indices = @transform_6, window_bounds = array<i64: 128, 64>}, {transform_indices = @transform_7, window_bounds = array<i64: 8, 2>}]} {
    %c0 = arith.constant 0 : index
    %c0_0 = arith.constant 0 : index
    %0 = vector.load %arg1[%c0, %c0_0] : memref<288x36xbf16, #tpu.memory_space<vmem>>, vector<288x36xbf16>
    %c0_1 = arith.constant 0 : index
    %c0_2 = arith.constant 0 : index
    %1 = vector.load %arg4[%c0_1, %c0_2] : memref<36x64xbf16, #tpu.memory_space<vmem>>, vector<36x64xbf16>
    %cst = arith.constant dense<0.000000e+00> : vector<288x64xf32>
    %2 = tpu.matmul %0, %1, %cst {dimension_numbers = #tpu.dot_dimension_numbers<[1], [0], [0], [1], [0, 0, 1, 1], [], []>} : vector<288x36xbf16>, vector<36x64xbf16>, vector<288x64xf32> -> vector<288x64xf32>
    %c2 = arith.constant 2 : index
    %c0_3 = arith.constant 0 : index
    %3 = vector.load %arg5[%c2, %c0_3] : memref<8x128xf32, #tpu.memory_space<vmem>>, vector<1x64xf32>
    %4 = vector.broadcast %3 : vector<1x64xf32> to vector<288x64xf32>
    %5 = arith.addf %2, %4 : vector<288x64xf32>
    %cst_4 = arith.constant 0.000000e+00 : f32
    %6 = vector.broadcast %cst_4 : f32 to vector<288x64xf32>
    %7 = arith.maximumf %5, %6 : vector<288x64xf32>
    %8 = vector.extract_strided_slice %7 {offsets = [0, 0], sizes = [8, 64], strides = [1, 1]} : vector<288x64xf32> to vector<8x64xf32>
    %c0_5 = arith.constant 0 : index
    %c0_6 = arith.constant 0 : index
    %9 = vector.load %arg9[%c0_5, %c0_6] : memref<8x2304xf32, #tpu.memory_space<vmem>>, vector<8x64xf32>
    tpu.vector_store %arg9[%c0_5, %c0_6], %8 {strides = array<i32>} : memref<8x2304xf32, #tpu.memory_space<vmem>>, vector<8x64xf32>,
    %10 = vector.extract_strided_slice %7 {offsets = [8, 0], sizes = [8, 64], strides = [1, 1]} : vector<288x64xf32> to vector<8x64xf32>
    %c0_7 = arith.constant 0 : index
    %c64 = arith.constant 64 : index
    %11 = vector.load %arg9[%c0_7, %c64] : memref<8x2304xf32, #tpu.memory_space<vmem>>, vector<8x64xf32>
    tpu.vector_store %arg9[%c0_7, %c64], %10 {strides = array<i32>} : memref<8x2304xf32, #tpu.memory_space<vmem>>, vector<8x64xf32>,
    %12 = vector.extract_strided_slice %7 {offsets = [16, 0], sizes = [8, 64], strides = [1, 1]} : vector<288x64xf32> to vector<8x64xf32>
    %c0_8 = arith.constant 0 : index
    %c128 = arith.constant 128 : index
    %13 = vector.load %arg9[%c0_8, %c128] : memref<8x2304xf32, #tpu.memory_space<vmem>>, vector<8x64xf32>
    tpu.vector_store %arg9[%c0_8, %c128], %12 {strides = array<i32>} : memref<8x2304xf32, #tpu.memory_space<vmem>>, vector<8x64xf32>,
    %14 = vector.extract_strided_slice %7 {offsets = [24, 0], sizes = [8, 64], strides = [1, 1]} : vector<288x64xf32> to vector<8x64xf32>
    %c0_9 = arith.constant 0 : index
    %c192 = arith.constant 192 : index
    %15 = vector.load %arg9[%c0_9, %c192] : memref<8x2304xf32, #tpu.memory_space<vmem>>, vector<8x64xf32>
    tpu.vector_store %arg9[%c0_9, %c192], %14 {strides = array<i32>} : memref<8x2304xf32, #tpu.memory_space<vmem>>, vector<8x64xf32>,
    %16 = vector.extract_strided_slice %7 {offsets = [32, 0], sizes = [8, 64], strides = [1, 1]} : vector<288x64xf32> to vector<8x64xf32>
    %c0_10 = arith.constant 0 : index
    %c256 = arith.constant 256 : index
    %17 = vector.load %arg9[%c0_10, %c256] : memref<8x2304xf32, #tpu.memory_space<vmem>>, vector<8x64xf32>
    tpu.vector_store %arg9[%c0_10, %c256], %16 {strides = array<i32>} : memref<8x2304xf32, #tpu.memory_space<vmem>>, vector<8x64xf32>,
    %18 = vector.extract_strided_slice %7 {offsets = [40, 0], sizes = [8, 64], strides = [1, 1]} : vector<288x64xf32> to vector<8x64xf32>
    %c0_11 = arith.constant 0 : index
    %c320 = arith.constant 320 : index
    %19 = vector.load %arg9[%c0_11, %c320] : memref<8x2304xf32, #tpu.memory_space<vmem>>, vector<8x64xf32>
    tpu.vector_store %arg9[%c0_11, %c320], %18 {strides = array<i32>} : memref<8x2304xf32, #tpu.memory_space<vmem>>, vector<8x64xf32>,
    %20 = vector.extract_strided_slice %7 {offsets = [48, 0], sizes = [8, 64], strides = [1, 1]} : vector<288x64xf32> to vector<8x64xf32>
    %c0_12 = arith.constant 0 : index
    %c384 = arith.constant 384 : index
    %21 = vector.load %arg9[%c0_12, %c384] : memref<8x2304xf32, #tpu.memory_space<vmem>>, vector<8x64xf32>
    tpu.vector_store %arg9[%c0_12, %c384], %20 {strides = array<i32>} : memref<8x2304xf32, #tpu.memory_space<vmem>>, vector<8x64xf32>,
    %22 = vector.extract_strided_slice %7 {offsets = [56, 0], sizes = [8, 64], strides = [1, 1]} : vector<288x64xf32> to vector<8x64xf32>
    %c0_13 = arith.constant 0 : index
    %c448 = arith.constant 448 : index
    %23 = vector.load %arg9[%c0_13, %c448] : memref<8x2304xf32, #tpu.memory_space<vmem>>, vector<8x64xf32>
    tpu.vector_store %arg9[%c0_13, %c448], %22 {strides = array<i32>} : memref<8x2304xf32, #tpu.memory_space<vmem>>, vector<8x64xf32>,
    %24 = vector.extract_strided_slice %7 {offsets = [64, 0], sizes = [8, 64], strides = [1, 1]} : vector<288x64xf32> to vector<8x64xf32>
    %c0_14 = arith.constant 0 : index
    %c512 = arith.constant 512 : index
    %25 = vector.load %arg9[%c0_14, %c512] : memref<8x2304xf32, #tpu.memory_space<vmem>>, vector<8x64xf32>
    tpu.vector_store %arg9[%c0_14, %c512], %24 {strides = array<i32>} : memref<8x2304xf32, #tpu.memory_space<vmem>>, vector<8x64xf32>,
    %26 = vector.extract_strided_slice %7 {offsets = [72, 0], sizes = [8, 64], strides = [1, 1]} : vector<288x64xf32> to vector<8x64xf32>
    %c0_15 = arith.constant 0 : index
    %c576 = arith.constant 576 : index
    %27 = vector.load %arg9[%c0_15, %c576] : memref<8x2304xf32, #tpu.memory_space<vmem>>, vector<8x64xf32>
    tpu.vector_store %arg9[%c0_15, %c576], %26 {strides = array<i32>} : memref<8x2304xf32, #tpu.memory_space<vmem>>, vector<8x64xf32>,
    %28 = vector.extract_strided_slice %7 {offsets = [80, 0], sizes = [8, 64], strides = [1, 1]} : vector<288x64xf32> to vector<8x64xf32>
    %c0_16 = arith.constant 0 : index
    %c640 = arith.constant 640 : index
    %29 = vector.load %arg9[%c0_16, %c640] : memref<8x2304xf32, #tpu.memory_space<vmem>>, vector<8x64xf32>
    tpu.vector_store %arg9[%c0_16, %c640], %28 {strides = array<i32>} : memref<8x2304xf32, #tpu.memory_space<vmem>>, vector<8x64xf32>,
    %30 = vector.extract_strided_slice %7 {offsets = [88, 0], sizes = [8, 64], strides = [1, 1]} : vector<288x64xf32> to vector<8x64xf32>
    %c0_17 = arith.constant 0 : index
    %c704 = arith.constant 704 : index
    %31 = vector.load %arg9[%c0_17, %c704] : memref<8x2304xf32, #tpu.memory_space<vmem>>, vector<8x64xf32>
    tpu.vector_store %arg9[%c0_17, %c704], %30 {strides = array<i32>} : memref<8x2304xf32, #tpu.memory_space<vmem>>, vector<8x64xf32>,
    %32 = vector.extract_strided_slice %7 {offsets = [96, 0], sizes = [8, 64], strides = [1, 1]} : vector<288x64xf32> to vector<8x64xf32>
    %c0_18 = arith.constant 0 : index
    %c768 = arith.constant 768 : index
    %33 = vector.load %arg9[%c0_18, %c768] : memref<8x2304xf32, #tpu.memory_space<vmem>>, vector<8x64xf32>
    tpu.vector_store %arg9[%c0_18, %c768], %32 {strides = array<i32>} : memref<8x2304xf32, #tpu.memory_space<vmem>>, vector<8x64xf32>,
    %34 = vector.extract_strided_slice %7 {offsets = [104, 0], sizes = [8, 64], strides = [1, 1]} : vector<288x64xf32> to vector<8x64xf32>
    %c0_19 = arith.constant 0 : index
    %c832 = arith.constant 832 : index
    %35 = vector.load %arg9[%c0_19, %c832] : memref<8x2304xf32, #tpu.memory_space<vmem>>, vector<8x64xf32>
    tpu.vector_store %arg9[%c0_19, %c832], %34 {strides = array<i32>} : memref<8x2304xf32, #tpu.memory_space<vmem>>, vector<8x64xf32>,
    %36 = vector.extract_strided_slice %7 {offsets = [112, 0], sizes = [8, 64], strides = [1, 1]} : vector<288x64xf32> to vector<8x64xf32>
    %c0_20 = arith.constant 0 : index
    %c896 = arith.constant 896 : index
    %37 = vector.load %arg9[%c0_20, %c896] : memref<8x2304xf32, #tpu.memory_space<vmem>>, vector<8x64xf32>
    tpu.vector_store %arg9[%c0_20, %c896], %36 {strides = array<i32>} : memref<8x2304xf32, #tpu.memory_space<vmem>>, vector<8x64xf32>,
    %38 = vector.extract_strided_slice %7 {offsets = [120, 0], sizes = [8, 64], strides = [1, 1]} : vector<288x64xf32> to vector<8x64xf32>
    %c0_21 = arith.constant 0 : index
    %c960 = arith.constant 960 : index
    %39 = vector.load %arg9[%c0_21, %c960] : memref<8x2304xf32, #tpu.memory_space<vmem>>, vector<8x64xf32>
    tpu.vector_store %arg9[%c0_21, %c960], %38 {strides = array<i32>} : memref<8x2304xf32, #tpu.memory_space<vmem>>, vector<8x64xf32>,
    %40 = vector.extract_strided_slice %7 {offsets = [128, 0], sizes = [8, 64], strides = [1, 1]} : vector<288x64xf32> to vector<8x64xf32>
    %c0_22 = arith.constant 0 : index
    %c1024 = arith.constant 1024 : index
    %41 = vector.load %arg9[%c0_22, %c1024] : memref<8x2304xf32, #tpu.memory_space<vmem>>, vector<8x64xf32>
    tpu.vector_store %arg9[%c0_22, %c1024], %40 {strides = array<i32>} : memref<8x2304xf32, #tpu.memory_space<vmem>>, vector<8x64xf32>,
    %42 = vector.extract_strided_slice %7 {offsets = [136, 0], sizes = [8, 64], strides = [1, 1]} : vector<288x64xf32> to vector<8x64xf32>
    %c0_23 = arith.constant 0 : index
    %c1088 = arith.constant 1088 : index
    %43 = vector.load %arg9[%c0_23, %c1088] : memref<8x2304xf32, #tpu.memory_space<vmem>>, vector<8x64xf32>
    tpu.vector_store %arg9[%c0_23, %c1088], %42 {strides = array<i32>} : memref<8x2304xf32, #tpu.memory_space<vmem>>, vector<8x64xf32>,
    %44 = vector.extract_strided_slice %7 {offsets = [144, 0], sizes = [8, 64], strides = [1, 1]} : vector<288x64xf32> to vector<8x64xf32>
    %c0_24 = arith.constant 0 : index
    %c1152 = arith.constant 1152 : index
    %45 = vector.load %arg9[%c0_24, %c1152] : memref<8x2304xf32, #tpu.memory_space<vmem>>, vector<8x64xf32>
    tpu.vector_store %arg9[%c0_24, %c1152], %44 {strides = array<i32>} : memref<8x2304xf32, #tpu.memory_space<vmem>>, vector<8x64xf32>,
    %46 = vector.extract_strided_slice %7 {offsets = [152, 0], sizes = [8, 64], strides = [1, 1]} : vector<288x64xf32> to vector<8x64xf32>
    %c0_25 = arith.constant 0 : index
    %c1216 = arith.constant 1216 : index
    %47 = vector.load %arg9[%c0_25, %c1216] : memref<8x2304xf32, #tpu.memory_space<vmem>>, vector<8x64xf32>
    tpu.vector_store %arg9[%c0_25, %c1216], %46 {strides = array<i32>} : memref<8x2304xf32, #tpu.memory_space<vmem>>, vector<8x64xf32>,
    %48 = vector.extract_strided_slice %7 {offsets = [160, 0], sizes = [8, 64], strides = [1, 1]} : vector<288x64xf32> to vector<8x64xf32>
    %c0_26 = arith.constant 0 : index
    %c1280 = arith.constant 1280 : index
    %49 = vector.load %arg9[%c0_26, %c1280] : memref<8x2304xf32, #tpu.memory_space<vmem>>, vector<8x64xf32>
    tpu.vector_store %arg9[%c0_26, %c1280], %48 {strides = array<i32>} : memref<8x2304xf32, #tpu.memory_space<vmem>>, vector<8x64xf32>,
    %50 = vector.extract_strided_slice %7 {offsets = [168, 0], sizes = [8, 64], strides = [1, 1]} : vector<288x64xf32> to vector<8x64xf32>
    %c0_27 = arith.constant 0 : index
    %c1344 = arith.constant 1344 : index
    %51 = vector.load %arg9[%c0_27, %c1344] : memref<8x2304xf32, #tpu.memory_space<vmem>>, vector<8x64xf32>
    tpu.vector_store %arg9[%c0_27, %c1344], %50 {strides = array<i32>} : memref<8x2304xf32, #tpu.memory_space<vmem>>, vector<8x64xf32>,
    %52 = vector.extract_strided_slice %7 {offsets = [176, 0], sizes = [8, 64], strides = [1, 1]} : vector<288x64xf32> to vector<8x64xf32>
    %c0_28 = arith.constant 0 : index
    %c1408 = arith.constant 1408 : index
    %53 = vector.load %arg9[%c0_28, %c1408] : memref<8x2304xf32, #tpu.memory_space<vmem>>, vector<8x64xf32>
    tpu.vector_store %arg9[%c0_28, %c1408], %52 {strides = array<i32>} : memref<8x2304xf32, #tpu.memory_space<vmem>>, vector<8x64xf32>,
    %54 = vector.extract_strided_slice %7 {offsets = [184, 0], sizes = [8, 64], strides = [1, 1]} : vector<288x64xf32> to vector<8x64xf32>
    %c0_29 = arith.constant 0 : index
    %c1472 = arith.constant 1472 : index
    %55 = vector.load %arg9[%c0_29, %c1472] : memref<8x2304xf32, #tpu.memory_space<vmem>>, vector<8x64xf32>
    tpu.vector_store %arg9[%c0_29, %c1472], %54 {strides = array<i32>} : memref<8x2304xf32, #tpu.memory_space<vmem>>, vector<8x64xf32>,
    %56 = vector.extract_strided_slice %7 {offsets = [192, 0], sizes = [8, 64], strides = [1, 1]} : vector<288x64xf32> to vector<8x64xf32>
    %c0_30 = arith.constant 0 : index
    %c1536 = arith.constant 1536 : index
    %57 = vector.load %arg9[%c0_30, %c1536] : memref<8x2304xf32, #tpu.memory_space<vmem>>, vector<8x64xf32>
    tpu.vector_store %arg9[%c0_30, %c1536], %56 {strides = array<i32>} : memref<8x2304xf32, #tpu.memory_space<vmem>>, vector<8x64xf32>,
    %58 = vector.extract_strided_slice %7 {offsets = [200, 0], sizes = [8, 64], strides = [1, 1]} : vector<288x64xf32> to vector<8x64xf32>
    %c0_31 = arith.constant 0 : index
    %c1600 = arith.constant 1600 : index
    %59 = vector.load %arg9[%c0_31, %c1600] : memref<8x2304xf32, #tpu.memory_space<vmem>>, vector<8x64xf32>
    tpu.vector_store %arg9[%c0_31, %c1600], %58 {strides = array<i32>} : memref<8x2304xf32, #tpu.memory_space<vmem>>, vector<8x64xf32>,
    %60 = vector.extract_strided_slice %7 {offsets = [208, 0], sizes = [8, 64], strides = [1, 1]} : vector<288x64xf32> to vector<8x64xf32>
    %c0_32 = arith.constant 0 : index
    %c1664 = arith.constant 1664 : index
    %61 = vector.load %arg9[%c0_32, %c1664] : memref<8x2304xf32, #tpu.memory_space<vmem>>, vector<8x64xf32>
    tpu.vector_store %arg9[%c0_32, %c1664], %60 {strides = array<i32>} : memref<8x2304xf32, #tpu.memory_space<vmem>>, vector<8x64xf32>,
    %62 = vector.extract_strided_slice %7 {offsets = [216, 0], sizes = [8, 64], strides = [1, 1]} : vector<288x64xf32> to vector<8x64xf32>
    %c0_33 = arith.constant 0 : index
    %c1728 = arith.constant 1728 : index
    %63 = vector.load %arg9[%c0_33, %c1728] : memref<8x2304xf32, #tpu.memory_space<vmem>>, vector<8x64xf32>
    tpu.vector_store %arg9[%c0_33, %c1728], %62 {strides = array<i32>} : memref<8x2304xf32, #tpu.memory_space<vmem>>, vector<8x64xf32>,
    %64 = vector.extract_strided_slice %7 {offsets = [224, 0], sizes = [8, 64], strides = [1, 1]} : vector<288x64xf32> to vector<8x64xf32>
    %c0_34 = arith.constant 0 : index
    %c1792 = arith.constant 1792 : index
    %65 = vector.load %arg9[%c0_34, %c1792] : memref<8x2304xf32, #tpu.memory_space<vmem>>, vector<8x64xf32>
    tpu.vector_store %arg9[%c0_34, %c1792], %64 {strides = array<i32>} : memref<8x2304xf32, #tpu.memory_space<vmem>>, vector<8x64xf32>,
    %66 = vector.extract_strided_slice %7 {offsets = [232, 0], sizes = [8, 64], strides = [1, 1]} : vector<288x64xf32> to vector<8x64xf32>
    %c0_35 = arith.constant 0 : index
    %c1856 = arith.constant 1856 : index
    %67 = vector.load %arg9[%c0_35, %c1856] : memref<8x2304xf32, #tpu.memory_space<vmem>>, vector<8x64xf32>
    tpu.vector_store %arg9[%c0_35, %c1856], %66 {strides = array<i32>} : memref<8x2304xf32, #tpu.memory_space<vmem>>, vector<8x64xf32>,
    %68 = vector.extract_strided_slice %7 {offsets = [240, 0], sizes = [8, 64], strides = [1, 1]} : vector<288x64xf32> to vector<8x64xf32>
    %c0_36 = arith.constant 0 : index
    %c1920 = arith.constant 1920 : index
    %69 = vector.load %arg9[%c0_36, %c1920] : memref<8x2304xf32, #tpu.memory_space<vmem>>, vector<8x64xf32>
    tpu.vector_store %arg9[%c0_36, %c1920], %68 {strides = array<i32>} : memref<8x2304xf32, #tpu.memory_space<vmem>>, vector<8x64xf32>,
    %70 = vector.extract_strided_slice %7 {offsets = [248, 0], sizes = [8, 64], strides = [1, 1]} : vector<288x64xf32> to vector<8x64xf32>
    %c0_37 = arith.constant 0 : index
    %c1984 = arith.constant 1984 : index
    %71 = vector.load %arg9[%c0_37, %c1984] : memref<8x2304xf32, #tpu.memory_space<vmem>>, vector<8x64xf32>
    tpu.vector_store %arg9[%c0_37, %c1984], %70 {strides = array<i32>} : memref<8x2304xf32, #tpu.memory_space<vmem>>, vector<8x64xf32>,
    %72 = vector.extract_strided_slice %7 {offsets = [256, 0], sizes = [8, 64], strides = [1, 1]} : vector<288x64xf32> to vector<8x64xf32>
    %c0_38 = arith.constant 0 : index
    %c2048 = arith.constant 2048 : index
    %73 = vector.load %arg9[%c0_38, %c2048] : memref<8x2304xf32, #tpu.memory_space<vmem>>, vector<8x64xf32>
    tpu.vector_store %arg9[%c0_38, %c2048], %72 {strides = array<i32>} : memref<8x2304xf32, #tpu.memory_space<vmem>>, vector<8x64xf32>,
    %74 = vector.extract_strided_slice %7 {offsets = [264, 0], sizes = [8, 64], strides = [1, 1]} : vector<288x64xf32> to vector<8x64xf32>
    %c0_39 = arith.constant 0 : index
    %c2112 = arith.constant 2112 : index
    %75 = vector.load %arg9[%c0_39, %c2112] : memref<8x2304xf32, #tpu.memory_space<vmem>>, vector<8x64xf32>
    tpu.vector_store %arg9[%c0_39, %c2112], %74 {strides = array<i32>} : memref<8x2304xf32, #tpu.memory_space<vmem>>, vector<8x64xf32>,
    %76 = vector.extract_strided_slice %7 {offsets = [272, 0], sizes = [8, 64], strides = [1, 1]} : vector<288x64xf32> to vector<8x64xf32>
    %c0_40 = arith.constant 0 : index
    %c2176 = arith.constant 2176 : index
    %77 = vector.load %arg9[%c0_40, %c2176] : memref<8x2304xf32, #tpu.memory_space<vmem>>, vector<8x64xf32>
    tpu.vector_store %arg9[%c0_40, %c2176], %76 {strides = array<i32>} : memref<8x2304xf32, #tpu.memory_space<vmem>>, vector<8x64xf32>,
    %78 = vector.extract_strided_slice %7 {offsets = [280, 0], sizes = [8, 64], strides = [1, 1]} : vector<288x64xf32> to vector<8x64xf32>
    %c0_41 = arith.constant 0 : index
    %c2240 = arith.constant 2240 : index
    %79 = vector.load %arg9[%c0_41, %c2240] : memref<8x2304xf32, #tpu.memory_space<vmem>>, vector<8x64xf32>
    tpu.vector_store %arg9[%c0_41, %c2240], %78 {strides = array<i32>} : memref<8x2304xf32, #tpu.memory_space<vmem>>, vector<8x64xf32>,
    %c0_42 = arith.constant 0 : index
    %c0_43 = arith.constant 0 : index
    %80 = vector.load %arg9[%c0_42, %c0_43] : memref<8x2304xf32, #tpu.memory_space<vmem>>, vector<8x2304xf32>
    %81 = arith.truncf %80 : vector<8x2304xf32> to vector<8x2304xbf16>
    %c0_44 = arith.constant 0 : index
    %c0_45 = arith.constant 0 : index
    %82 = vector.load %arg6[%c0_44, %c0_45] : memref<2304x128xbf16, #tpu.memory_space<vmem>>, vector<2304x128xbf16>
    %cst_46 = arith.constant dense<0.000000e+00> : vector<8x128xf32>
    %83 = tpu.matmul %81, %82, %cst_46 {dimension_numbers = #tpu.dot_dimension_numbers<[1], [0], [0], [1], [0, 0, 1, 1], [], []>} : vector<8x2304xbf16>, vector<2304x128xbf16>, vector<8x128xf32> -> vector<8x128xf32>
    %c0_47 = arith.constant 0 : index
    %c0_48 = arith.constant 0 : index
    %84 = vector.load %arg5[%c0_47, %c0_48] : memref<8x128xf32, #tpu.memory_space<vmem>>, vector<1x128xf32>
    %85 = vector.broadcast %84 : vector<1x128xf32> to vector<8x128xf32>
    %86 = arith.addf %83, %85 : vector<8x128xf32>
    %cst_49 = arith.constant 0.000000e+00 : f32
    %87 = vector.broadcast %cst_49 : f32 to vector<8x128xf32>
    %88 = arith.maximumf %86, %87 : vector<8x128xf32>
    %89 = arith.truncf %88 : vector<8x128xf32> to vector<8x128xbf16>
    %c0_50 = arith.constant 0 : index
    %c0_51 = arith.constant 0 : index
    %90 = vector.load %arg7[%c0_50, %c0_51] : memref<128x64xbf16, #tpu.memory_space<vmem>>, vector<128x64xbf16>
    %cst_52 = arith.constant dense<0.000000e+00> : vector<8x64xf32>
    %91 = tpu.matmul %89, %90, %cst_52 {dimension_numbers = #tpu.dot_dimension_numbers<[1], [0], [0], [1], [0, 0, 1, 1], [], []>} : vector<8x128xbf16>, vector<128x64xbf16>, vector<8x64xf32> -> vector<8x64xf32>
    %c1 = arith.constant 1 : index
    %c0_53 = arith.constant 0 : index
    %92 = vector.load %arg5[%c1, %c0_53] : memref<8x128xf32, #tpu.memory_space<vmem>>, vector<1x64xf32>
    %93 = vector.broadcast %92 : vector<1x64xf32> to vector<8x64xf32>
    %94 = arith.addf %91, %93 : vector<8x64xf32>
    %cst_54 = arith.constant 0.000000e+00 : f32
    %95 = vector.broadcast %cst_54 : f32 to vector<8x64xf32>
    %96 = arith.maximumf %94, %95 : vector<8x64xf32>
    %c4 = arith.constant 4 : index
    %c0_55 = arith.constant 0 : index
    %97 = vector.load %arg5[%c4, %c0_55] : memref<8x128xf32, #tpu.memory_space<vmem>>, vector<1x64xf32>
    %98 = vector.broadcast %97 : vector<1x64xf32> to vector<8x64xf32>
    %99 = arith.mulf %96, %98 : vector<8x64xf32>
    %cst_56 = arith.constant dense<0.000000e+00> : vector<8xf32>
    %100 = vector.multi_reduction <add>, %99, %cst_56 [1] : vector<8x64xf32> to vector<8xf32>
    %101 = vector.shape_cast %100 : vector<8xf32> to vector<8x1xf32>
    %c3 = arith.constant 3 : index
    %c0_57 = arith.constant 0 : index
    %102 = vector.load %arg5[%c3, %c0_57] : memref<8x128xf32, #tpu.memory_space<vmem>>, vector<1x1xf32>
    %103 = vector.broadcast %102 : vector<1x1xf32> to vector<8x1xf32>
    %104 = arith.addf %101, %103 : vector<8x1xf32>
    %c5 = arith.constant 5 : index
    %c0_58 = arith.constant 0 : index
    %105 = vector.load %arg5[%c5, %c0_58] : memref<8x128xf32, #tpu.memory_space<vmem>>, vector<1x64xf32>
    %106 = vector.broadcast %105 : vector<1x64xf32> to vector<8x64xf32>
    %107 = arith.mulf %96, %106 : vector<8x64xf32>
    %cst_59 = arith.constant dense<0.000000e+00> : vector<8xf32>
    %108 = vector.multi_reduction <add>, %107, %cst_59 [1] : vector<8x64xf32> to vector<8xf32>
    %109 = vector.shape_cast %108 : vector<8xf32> to vector<8x1xf32>
    %c3_60 = arith.constant 3 : index
    %c1_61 = arith.constant 1 : index
    %110 = vector.load %arg5[%c3_60, %c1_61] : memref<8x128xf32, #tpu.memory_space<vmem>>, vector<1x1xf32>
    %111 = vector.broadcast %110 : vector<1x1xf32> to vector<8x1xf32>
    %112 = arith.addf %109, %111 : vector<8x1xf32>
    %cst_62 = arith.constant -2.000000e+00 : f32
    %cst_63 = arith.constant 2.000000e+00 : f32
    %113 = vector.broadcast %cst_62 : f32 to vector<8x1xf32>
    %114 = arith.maximumf %113, %104 : vector<8x1xf32>
    %115 = vector.broadcast %cst_63 : f32 to vector<8x1xf32>
    %116 = arith.minimumf %115, %114 : vector<8x1xf32>
    %cst_64 = arith.constant -2.000000e+00 : f32
    %cst_65 = arith.constant 2.000000e+00 : f32
    %117 = vector.broadcast %cst_64 : f32 to vector<8x1xf32>
    %118 = arith.maximumf %117, %112 : vector<8x1xf32>
    %119 = vector.broadcast %cst_65 : f32 to vector<8x1xf32>
    %120 = arith.minimumf %119, %118 : vector<8x1xf32>
    %c0_66 = arith.constant 0 : index
    %c0_67 = arith.constant 0 : index
    %121 = vector.load %arg2[%c0_66, %c0_67] : memref<8x6xf32, #tpu.memory_space<vmem>>, vector<8x6xf32>
    %c0_68 = arith.constant 0 : index
    %122 = memref.load %arg3[%c0_68] : memref<1xf32, #tpu.memory_space<smem>>
    %cst_69 = arith.constant 5.000000e-01 : f32
    %123 = arith.mulf %122, %cst_69 : f32
    %124 = vector.extract_strided_slice %121 {offsets = [0, 0], sizes = [8, 1], strides = [1, 1]} : vector<8x6xf32> to vector<8x1xf32>
    %125 = arith.mulf %124, %116 : vector<8x1xf32>
    %126 = vector.extract_strided_slice %121 {offsets = [0, 1], sizes = [8, 1], strides = [1, 1]} : vector<8x6xf32> to vector<8x1xf32>
    %127 = arith.mulf %126, %120 : vector<8x1xf32>
    %128 = arith.addf %125, %127 : vector<8x1xf32>
    %129 = vector.extract_strided_slice %121 {offsets = [0, 2], sizes = [8, 1], strides = [1, 1]} : vector<8x6xf32> to vector<8x1xf32>
    %130 = arith.addf %128, %129 : vector<8x1xf32>
    %cst_70 = arith.constant 1.000000e+00 : f32
    %131 = vector.broadcast %cst_70 : f32 to vector<8x1xf32>
    %132 = arith.addf %130, %131 : vector<8x1xf32>
    %133 = vector.broadcast %123 : f32 to vector<8x1xf32>
    %134 = arith.mulf %132, %133 : vector<8x1xf32>
    %c0_71 = arith.constant 0 : index
    %c0_72 = arith.constant 0 : index
    %135 = vector.load %arg8[%c0_71, %c0_72] : memref<8x2xf32, #tpu.memory_space<vmem>>, vector<8x1xf32>
    tpu.vector_store %arg8[%c0_71, %c0_72], %134 {strides = array<i32>} : memref<8x2xf32, #tpu.memory_space<vmem>>, vector<8x1xf32>,
    %136 = vector.extract_strided_slice %121 {offsets = [0, 3], sizes = [8, 1], strides = [1, 1]} : vector<8x6xf32> to vector<8x1xf32>
    %137 = arith.mulf %136, %116 : vector<8x1xf32>
    %138 = vector.extract_strided_slice %121 {offsets = [0, 4], sizes = [8, 1], strides = [1, 1]} : vector<8x6xf32> to vector<8x1xf32>
    %139 = arith.mulf %138, %120 : vector<8x1xf32>
    %140 = arith.addf %137, %139 : vector<8x1xf32>
    %141 = vector.extract_strided_slice %121 {offsets = [0, 5], sizes = [8, 1], strides = [1, 1]} : vector<8x6xf32> to vector<8x1xf32>
    %142 = arith.addf %140, %141 : vector<8x1xf32>
    %cst_73 = arith.constant 1.000000e+00 : f32
    %143 = vector.broadcast %cst_73 : f32 to vector<8x1xf32>
    %144 = arith.addf %142, %143 : vector<8x1xf32>
    %145 = vector.broadcast %123 : f32 to vector<8x1xf32>
    %146 = arith.mulf %144, %145 : vector<8x1xf32>
    %c0_74 = arith.constant 0 : index
    %c1_75 = arith.constant 1 : index
    %147 = vector.load %arg8[%c0_74, %c1_75] : memref<8x2xf32, #tpu.memory_space<vmem>>, vector<8x1xf32>
    tpu.vector_store %arg8[%c0_74, %c1_75], %146 {strides = array<i32>} : memref<8x2xf32, #tpu.memory_space<vmem>>, vector<8x1xf32>,
    return
  }
  func.func @transform_0(%arg0: i32) -> (i32, i32) {
    %c0_i32 = arith.constant 0 : i32
    %c0_i32_0 = arith.constant 0 : i32
    return %arg0, %c0_i32 : i32, i32
  }
  func.func @transform_1(%arg0: i32) -> (i32, i32) {
    %c0_i32 = arith.constant 0 : i32
    %c0_i32_0 = arith.constant 0 : i32
    return %arg0, %c0_i32 : i32, i32
  }
  func.func @transform_2(%arg0: i32) -> i32 {
    %c0_i32 = arith.constant 0 : i32
    %c0_i32_0 = arith.constant 0 : i32
    return %c0_i32 : i32
  }
  func.func @transform_3(%arg0: i32) -> (i32, i32) {
    %c0_i32 = arith.constant 0 : i32
    %c0_i32_0 = arith.constant 0 : i32
    %c0_i32_1 = arith.constant 0 : i32
    return %c0_i32, %c0_i32_0 : i32, i32
  }
  func.func @transform_4(%arg0: i32) -> (i32, i32) {
    %c0_i32 = arith.constant 0 : i32
    %c0_i32_0 = arith.constant 0 : i32
    %c0_i32_1 = arith.constant 0 : i32
    return %c0_i32, %c0_i32_0 : i32, i32
  }
  func.func @transform_5(%arg0: i32) -> (i32, i32) {
    %c0_i32 = arith.constant 0 : i32
    %c0_i32_0 = arith.constant 0 : i32
    %c0_i32_1 = arith.constant 0 : i32
    return %c0_i32, %c0_i32_0 : i32, i32
  }
  func.func @transform_6(%arg0: i32) -> (i32, i32) {
    %c0_i32 = arith.constant 0 : i32
    %c0_i32_0 = arith.constant 0 : i32
    %c0_i32_1 = arith.constant 0 : i32
    return %c0_i32, %c0_i32_0 : i32, i32
  }
  func.func @transform_7(%arg0: i32) -> (i32, i32) {
    %c0_i32 = arith.constant 0 : i32
    %c0_i32_0 = arith.constant 0 : i32
    return %arg0, %c0_i32 : i32, i32
  }
}

</mosaic_0001>

<bundles_post_ra>
// kernel: corner_head_v2_forward.1
= control target key start
LH: loop header
LB: loop body
LE: loop exit
PB: predicated region body
PF: predicated region fallthrough
CT: control target
= control target key end

     0   :  { %vm231_vm0 = vcmask 1041408   ;;  %vm176_vm1 = vcmask 293888   ;;  %vm370_vm2 = vcmask 523264   ;;  %s2950_s26 = smov 64   ;;  %vm376_vm3 = vcmask 1048064   ;;  %s2951_s15 = smov 3   ;;  %s3658_s3 = inlined_call_operand.vmem [shape: bf16[36,64], index: 3, kind: input, shape index: {}]   ;;  %s3659_s4 = inlined_call_operand.vmem [shape: f32[8,128], index: 4, kind: input, shape index: {}]   ;;  %s3660_s0 = inlined_call_operand.vmem [shape: bf16[288,36], index: 0, kind: input, shape index: {}]   ;;  %s3661_s5 = inlined_call_operand.vmem [shape: bf16[2304,128], index: 5, kind: input, shape index: {}]   ;;  %s3662_s6 = inlined_call_operand.vmem [shape: bf16[128,64], index: 6, kind: input, shape index: {}]   ;;  %s3663_s1 = inlined_call_operand.vmem [shape: f32[8,6], index: 1, kind: input, shape index: {}]   ;;  %s3664_s2 = inlined_call_operand.<no memory space> [shape: f32[1], index: 2, kind: input, shape index: {}]   ;;  %s3665_s7 = inlined_call_operand.vmem [shape: f32[8,2], index: 7, kind: output, shape index: {}]  }
   0x1   :  { %v68_v0 = vld [vmem:[%s3658_s3 + $0x10] sm:$0x3]  ;;  %v2781_v4 = vld [vmem:[%s3658_s3 + $0x8] sm:$0xff]  ;;  %v2780_v5 = vld [vmem:[%s3658_s3] sm:$0xff]  ;;  %s2953_s18 = smov 126   ;;  %s2008_s20 = smul.f32 0.5, %s3664_s2 }
   0x2   :  { %v170_v1 = vunpack.c.l.b16 %v68_v0  ;;  %v2762_v6 = vld [vmem:[%s3660_s0] sm:$0xff]  ;;  %v2763_v7 = vld [vmem:[%s3660_s0 + $0x8] sm:$0xff]  ;;  %v2764_v8 = vld [vmem:[%s3660_s0 + $0x10] sm:$0xff]  ;;  %vm2024_vm4 = vcmask 7168   ;;  %vm2048_vm5 = vcmask 15368  }
   0x3   :  { %v2765_v9 = vld [vmem:[%s3660_s0 + $0x18] sm:$0xff]  ;;  %v2766_v10 = vld [vmem:[%s3660_s0 + $0x20] sm:$0xff]  ;;  %v2767_v11 = vld [vmem:[%s3660_s0 + $0x28] sm:$0xff] }
   0x4   :  { %v173_v2 = vpack.c.b16 %v170_v1, %v170_v1  ;;  %v2768_v12 = vld [vmem:[%s3660_s0 + $0x30] sm:$0xff]  ;;  %v2769_v13 = vld [vmem:[%s3660_s0 + $0x38] sm:$0xff]  ;;  %v3038_v14 = vld [vmem:[%s3659_s4 + $0x2] ss:$0 sm:$0xff] }
   0x5   :  { %v2770_v15 = vld [vmem:[%s3660_s0 + $0x40] sm:$0xff]  ;;  %v2771_v22 = vld [vmem:[%s3660_s0 + $0x48] sm:$0xff]  ;;  %v2776_v29 = vld [vmem:[%s3660_s0 + $0x70] sm:$0xff] }
   0x6   :  { %v233_v3 = vsel %vm231_vm0, %v173_v2, 0  ;;  %v2778_v30 = vld [vmem:[%s3660_s0 + $0x80] sm:$0xff]  ;;  %v2772_v31 = vld [vmem:[%s3660_s0 + $0x50] sm:$0xff]  ;;  %v2779_v38 = vld [vmem:[%s3660_s0 + $0x88] sm:$0xff] }
   0x7   :  { %240 = vmatpush.bf16.msra.mxu0 %v233_v3  ;;  %2934 = vmatpush.bf16.msra.mxu2 %v233_v3  ;;  %v2773_v39 = vld [vmem:[%s3660_s0 + $0x58] sm:$0xff]  ;;  %v2774_v44 = vld [vmem:[%s3660_s0 + $0x60] sm:$0xff]  ;;  %v2788_v53 = vld [vmem:[%s3661_s5 + $0x30] sm:$0xff] }
   0x8   :  { %2935 = vmatpush.bf16.msra.mxu3 %v233_v3  ;;  %v2777_v48 = vld [vmem:[%s3660_s0 + $0x78] sm:$0xff]  ;;  %v2775_v54 = vld [vmem:[%s3660_s0 + $0x68] sm:$0xff]  ;;  %v2786_v59 = vld [vmem:[%s3661_s5 + $0x20] sm:$0xff] }
   0x9   :  { %v2789_v51 = vld [vmem:[%s3661_s5 + $0x38] sm:$0xff]  ;;  %v2787_v57 = vld [vmem:[%s3661_s5 + $0x28] sm:$0xff]  ;;  %v2784_v1 = vld [vmem:[%s3661_s5 + $0x10] sm:$0xff] }
   0xa   :  { %1670 = vmatpush.bf16.msra.mxu1 %v2789_v51  ;;  %v2785_v62 = vld [vmem:[%s3661_s5 + $0x18] sm:$0xff]  ;;  %v2796_v2 = vld [vmem:[%s3661_s5 + $0x70] sm:$0xff] }
   0xb   :  { %241 = vmatpush.bf16.msra.mxu0 %v2781_v4  ;;  %2936 = vmatpush.bf16.msra.mxu2 %v2781_v4  ;;  %v2797_v63 = vld [vmem:[%s3661_s5 + $0x78] sm:$0xff] }
   0xc   :  { %2937 = vmatpush.bf16.msra.mxu3 %v2781_v4  ;;  %v2809_v51 = vld [vmem:[%s3661_s5 + $0xd8] sm:$0xff] }
   0xe   :  { %1671 = vmatpush.bf16.msra.mxu1 %v2788_v53  ;;  %v2826_v53 = vld [vmem:[%s3661_s5 + $0x160] sm:$0xff] }
   0xf   :  { %242 = vmatpush.bf16.msra.mxu0 %v2780_v5  ;;  %2938 = vmatpush.bf16.msra.mxu2 %v2780_v5 }
  0x10   :  { %2939 = vmatpush.bf16.msra.mxu3 %v2780_v5 }
  0x12   :  { %2134 = vmatmul.msk.bf16.vlgmr.msra.gmra.mxu0 %vm176_vm1, %v2762_v6  ;;  %2148 = vmatmul.msk.bf16.vlgmr.msra.gmra.mxu2 %vm176_vm1, %v2776_v29  ;;  %v2783_v6 = vld [vmem:[%s3661_s5 + $0x8] sm:$0xff]  ;;  %v2800_v29 = vld [vmem:[%s3661_s5 + $0x90] sm:$0xff] }
  0x13   :  { %2150 = vmatmul.msk.bf16.vlgmr.msra.gmra.mxu3 %vm176_vm1, %v2778_v30  ;;  %1672 = vmatpush.bf16.msra.mxu1 %v2787_v57 }
  0x14   :  { %1683 = vmatpush.bf16.msrb.mxu2 %v2797_v63  ;;  %v2824_v63 = vld [vmem:[%s3661_s5 + $0x150] sm:$0xff] }
  0x17   :  { %1673 = vmatpush.bf16.msra.mxu1 %v2786_v59  ;;  %v2825_v59 = vld [vmem:[%s3661_s5 + $0x158] sm:$0xff] }
  0x18   :  { %1684 = vmatpush.bf16.msrb.mxu2 %v2796_v2 }
  0x1b   :  { %1674 = vmatpush.bf16.msra.mxu1 %v2785_v62  ;;  %v2818_v62 = vld [vmem:[%s3661_s5 + $0x120] sm:$0xff] }
  0x1f   :  { %1675 = vmatpush.bf16.msra.mxu1 %v2784_v1 }
  0x22   :  { %2135 = vmatmul.msk.bf16.gmra.mxu0 %vm176_vm1, %v2763_v7  ;;  %2149 = vmatmul.msk.bf16.gmra.mxu2 %vm176_vm1, %v2777_v48  ;;  %v2795_v7 = vld [vmem:[%s3661_s5 + $0x68] sm:$0xff]  ;;  %v2821_v48 = vld [vmem:[%s3661_s5 + $0x138] sm:$0xff] }
  0x23   :  { %2151 = vmatmul.msk.bf16.gmra.mxu3 %vm176_vm1, %v2779_v38  ;;  %1676 = vmatpush.bf16.msra.mxu1 %v2783_v6  ;;  %v2823_v6 = vld [vmem:[%s3661_s5 + $0x148] sm:$0xff] }
  0x24   :  { %1685 = vmatpush.bf16.msrb.mxu2 %v2795_v7  ;;  %v2837_v7 = vld [vmem:[%s3661_s5 + $0x1b8] sm:$0xff] }
  0x32   :  { %2136 = vmatmul.msk.bf16.gmra.mxu0 %vm176_vm1, %v2764_v8 }
  0x42   :  { %2137 = vmatmul.msk.bf16.gmra.mxu0 %vm176_vm1, %v2765_v9 }
  0x52   :  { %2138 = vmatmul.msk.bf16.gmra.mxu0 %vm176_vm1, %v2766_v10  ;;  %v2805_v10 = vld [vmem:[%s3661_s5 + $0xb8] sm:$0xff] }
  0x53   :  { %1696 = vmatpush.bf16.msrb.mxu3 %v2805_v10  ;;  %v2822_v10 = vld [vmem:[%s3661_s5 + $0x140] sm:$0xff] }
  0x62   :  { %2139 = vmatmul.msk.bf16.gmra.mxu0 %vm176_vm1, %v2767_v11  ;;  %v2782_v11 = vld [vmem:[%s3661_s5] sm:$0xff] }
  0x63   :  { %1677 = vmatpush.bf16.msra.mxu1 %v2782_v11  ;;  %v2836_v11 = vld [vmem:[%s3661_s5 + $0x1b0] sm:$0xff] }
  0x72   :  { %2140 = vmatmul.msk.bf16.gmra.mxu0 %vm176_vm1, %v2768_v12  ;;  %v2794_v12 = vld [vmem:[%s3661_s5 + $0x60] sm:$0xff] }
  0x73   :  { %1686 = vmatpush.bf16.msrb.mxu2 %v2794_v12 }
  0x82   :  { %2141 = vmatmul.msk.bf16.gmra.mxu0 %vm176_vm1, %v2769_v13 }
  0x8f   :  { %v244_v16 = vpop.f32.mrf.mxu0 }
  0x90   :  { %v245_v17 = vadd.f32 %v3038_v14, %v244_v16 }
  0x92   :  { %v334_v18 = vmax.f32 %v245_v17, 0.0  ;;  %2142 = vmatmul.msk.bf16.gmra.mxu0 %vm176_vm1, %v2770_v15  ;;  %v2804_v15 = vld [vmem:[%s3661_s5 + $0xb0] sm:$0xff]  ;;  %v2793_v17 = vld [vmem:[%s3661_s5 + $0x58] sm:$0xff] }
  0x93   :  { %1697 = vmatpush.bf16.msrb.mxu3 %v2804_v15  ;;  %1687 = vmatpush.bf16.msrb.mxu2 %v2793_v17  ;;  %v2835_v17 = vld [vmem:[%s3661_s5 + $0x1a8] sm:$0xff] }
  0x94   :  { %371 = vst.msk [vmem:[#allocation2] sm:$0xff] %vm370_vm2, %v334_v18 }
  0x97   :  { %v246_v19 = vpop.f32.mrf.mxu0 }
  0x98   :  { %v247_v20 = vadd.f32 %v3038_v14, %v246_v19  ;;  %v2803_v19 = vld [vmem:[%s3661_s5 + $0xa8] sm:$0xff] }
  0x99   :  { %1698 = vmatpush.bf16.msrb.mxu3 %v2803_v19  ;;  %v324_v19 = vpop.f32.mrf.mxu3 }
  0x9a   :  { %v335_v21 = vmax.f32 %v247_v20, 0.0  ;;  %v2792_v20 = vld [vmem:[%s3661_s5 + $0x50] sm:$0xff] }
  0x9b   :  { %1688 = vmatpush.bf16.msrb.mxu2 %v2792_v20  ;;  %v314_v20 = vpop.f32.mrf.mxu2 }
  0x9c   :  { %373 = vrot.lane.b32.xlu1 %v335_v21, %s2950_s26 }
  0x9f   :  { %v249_v23 = vpop.f32.mrf.mxu0 }
  0xa0   :  { %v250_v24 = vadd.f32 %v3038_v14, %v249_v23 }
  0xa2   :  { %v336_v25 = vmax.f32 %v250_v24, 0.0  ;;  %2143 = vmatmul.msk.bf16.gmra.mxu0 %vm176_vm1, %v2771_v22  ;;  %v2802_v22 = vld [vmem:[%s3661_s5 + $0xa0] sm:$0xff]  ;;  %v2791_v24 = vld [vmem:[%s3661_s5 + $0x48] sm:$0xff] }
  0xa3   :  { %1699 = vmatpush.bf16.msrb.mxu3 %v2802_v22  ;;  %1689 = vmatpush.bf16.msrb.mxu2 %v2791_v24  ;;  %v325_v22 = vadd.f32 %v3038_v14, %v324_v19  ;;  %v2834_v24 = vld [vmem:[%s3661_s5 + $0x1a0] sm:$0xff] }
  0xa4   :  { %378 = vst.msk [vmem:[#allocation2 + $0x8] sm:$0xff] %vm370_vm2, %v336_v25 }
  0xa7   :  { %v251_v26 = vpop.f32.mrf.mxu0 }
  0xa8   :  { %v252_v27 = vadd.f32 %v3038_v14, %v251_v26  ;;  %v2801_v26 = vld [vmem:[%s3661_s5 + $0x98] sm:$0xff] }
  0xa9   :  { %1700 = vmatpush.bf16.msrb.mxu3 %v2801_v26 }
  0xaa   :  { %v337_v28 = vmax.f32 %v252_v27, 0.0  ;;  %v2790_v27 = vld [vmem:[%s3661_s5 + $0x40] sm:$0xff] }
  0xab   :  { %1690 = vmatpush.bf16.msrb.mxu2 %v2790_v27  ;;  %v366_v27 = vmax.f32 %v325_v22, 0.0  ;;  %v2839_v22 = vld [vmem:[%s3661_s5 + $0x1c8] sm:$0xff] }
  0xac   :  { %380 = vrot.lane.b32.xlu0 %v337_v28, %s2950_s26 }
  0xad   :  { %1701 = vmatpush.bf16.msrb.mxu3 %v2800_v29  ;;  %468 = vst.msk [vmem:[#allocation2 + $0x80] sm:$0xff] %vm370_vm2, %v366_v27  ;;  %v2849_v27 = vld [vmem:[%s3661_s5 + $0x218] sm:$0xff] }
  0xaf   :  { %v254_v32 = vpop.f32.mrf.mxu0  ;;  %1722 = vmatpush.bf16.msra.mxu2 %v2821_v48 }
  0xb0   :  { %v255_v33 = vadd.f32 %v3038_v14, %v254_v32  ;;  %v2799_v32 = vld [vmem:[%s3661_s5 + $0x88] sm:$0xff] }
  0xb1   :  { %1702 = vmatpush.bf16.msrb.mxu3 %v2799_v32 }
  0xb2   :  { %v338_v34 = vmax.f32 %v255_v33, 0.0  ;;  %2144 = vmatmul.msk.bf16.gmra.mxu0 %vm176_vm1, %v2772_v31  ;;  %v2813_v33 = vld [vmem:[%s3661_s5 + $0xf8] sm:$0xff] }
  0xb3   :  { %1709 = vmatpush.bf16.msrb.mxu1 %v2813_v33  ;;  %v3289_v33 = vpop.f32.mrf.mxu3 }
  0xb4   :  { %384 = vst.msk [vmem:[#allocation2 + $0x10] sm:$0xff] %vm370_vm2, %v338_v34 }
  0xb7   :  { %v256_v35 = vpop.f32.mrf.mxu0 }
  0xb8   :  { %v257_v36 = vadd.f32 %v3038_v14, %v256_v35 }
  0xba   :  { %v339_v37 = vmax.f32 %v257_v36, 0.0  ;;  %v2798_v36 = vld [vmem:[%s3661_s5 + $0x80] sm:$0xff] }
  0xbb   :  { %1703 = vmatpush.bf16.msrb.mxu3 %v2798_v36 }
  0xbc   :  { %386 = vrot.lane.b32.xlu0 %v339_v37, %s2950_s26  ;;  %v2812_v37 = vld [vmem:[%s3661_s5 + $0xf0] sm:$0xff] }
  0xbd   :  { %1710 = vmatpush.bf16.msrb.mxu1 %v2812_v37  ;;  %v2831_v37 = vld [vmem:[%s3661_s5 + $0x188] sm:$0xff] }
  0xbf   :  { %v259_v40 = vpop.f32.mrf.mxu0 }
  0xc0   :  { %v260_v41 = vadd.f32 %v3038_v14, %v259_v40 }
  0xc2   :  { %v340_v42 = vmax.f32 %v260_v41, 0.0  ;;  %2145 = vmatmul.msk.bf16.gmra.mxu0 %vm176_vm1, %v2773_v39  ;;  %v2829_v39 = vld [vmem:[%s3661_s5 + $0x178] sm:$0xff]  ;;  %v2811_v41 = vld [vmem:[%s3661_s5 + $0xe8] sm:$0xff] }
  0xc3   :  { %1735 = vmatpush.bf16.msra.mxu3 %v2829_v39  ;;  %1711 = vmatpush.bf16.msrb.mxu1 %v2811_v41  ;;  %v329_v39 = vpop.f32.mrf.mxu3  ;;  %v2830_v41 = vld [vmem:[%s3661_s5 + $0x180] sm:$0xff] }
  0xc4   :  { %390 = vst.msk [vmem:[#allocation2 + $0x18] sm:$0xff] %vm370_vm2, %v340_v42  ;;  %v2828_v42 = vld [vmem:[%s3661_s5 + $0x170] sm:$0xff] }
  0xc7   :  { %v261_v43 = vpop.f32.mrf.mxu0  ;;  %1736 = vmatpush.bf16.msra.mxu3 %v2828_v42 }
  0xc8   :  { %v262_v3 = vadd.f32 %v3038_v14, %v261_v43 }
  0xca   :  { %v341_v8 = vmax.f32 %v262_v3, 0.0  ;;  %v2806_v3 = vld [vmem:[%s3661_s5 + $0xc0] sm:$0xff] }
  0xcf   :  { %v264_v45 = vpop.f32.mrf.mxu0 }
  0xd0   :  { %v265_v46 = vadd.f32 %v3038_v14, %v264_v45 }
  0xd2   :  { %v342_v47 = vmax.f32 %v265_v46, 0.0  ;;  %2146 = vmatmul.msk.bf16.gmra.mxu0 %vm176_vm1, %v2774_v44  ;;  %v2810_v46 = vld [vmem:[%s3661_s5 + $0xe0] sm:$0xff] }
  0xd3   :  { %1712 = vmatpush.bf16.msrb.mxu1 %v2810_v46  ;;  %v316_v46 = vpop.f32.mrf.mxu2 }
  0xd4   :  { %396 = vst.msk [vmem:[#allocation2 + $0x20] sm:$0xff] %vm370_vm2, %v342_v47 }
  0xd7   :  { %v266_v49 = vpop.f32.mrf.mxu0  ;;  %1713 = vmatpush.bf16.msrb.mxu1 %v2809_v51 }
  0xd8   :  { %v267_v50 = vadd.f32 %v3038_v14, %v266_v49  ;;  %v2827_v49 = vld [vmem:[%s3661_s5 + $0x168] sm:$0xff] }
  0xd9   :  { %1737 = vmatpush.bf16.msra.mxu3 %v2827_v49  ;;  %v317_v49 = vadd.f32 %v3038_v14, %v316_v46  ;;  %v2869_v46 = vld [vmem:[%s3661_s5 + $0x2b8] sm:$0xff] }
  0xda   :  { %v343_v52 = vmax.f32 %v267_v50, 0.0 }
  0xdc   :  { %398 = vrot.lane.b32.xlu1 %v343_v52, %s2950_s26  ;;  %v2820_v52 = vld [vmem:[%s3661_s5 + $0x130] sm:$0xff] }
  0xdd   :  { %1723 = vmatpush.bf16.msra.mxu2 %v2820_v52  ;;  %1738 = vmatpush.bf16.msra.mxu3 %v2826_v53 }
  0xdf   :  { %v269_v55 = vpop.f32.mrf.mxu0 }
  0xe0   :  { %v270_v56 = vadd.f32 %v3038_v14, %v269_v55 }
  0xe1   :  { %1739 = vmatpush.bf16.msra.mxu3 %v2825_v59  ;;  %v331_v59 = vpop.f32.mrf.mxu3 }
  0xe2   :  { %v344_v58 = vmax.f32 %v270_v56, 0.0  ;;  %2147 = vmatmul.msk.bf16.gmra.mxu0 %vm176_vm1, %v2775_v54  ;;  %v2808_v56 = vld [vmem:[%s3661_s5 + $0xd0] sm:$0xff] }
  0xe3   :  { %1714 = vmatpush.bf16.msrb.mxu1 %v2808_v56  ;;  %v2843_v56 = vld [vmem:[%s3661_s5 + $0x1e8] sm:$0xff] }
  0xe4   :  { %402 = vst.msk [vmem:[#allocation2 + $0x28] sm:$0xff] %vm370_vm2, %v344_v58  ;;  %v2819_v58 = vld [vmem:[%s3661_s5 + $0x128] sm:$0xff] }
  0xe5   :  { %1724 = vmatpush.bf16.msra.mxu2 %v2819_v58  ;;  %1740 = vmatpush.bf16.msra.mxu3 %v2824_v63  ;;  %v363_v58 = vmax.f32 %v317_v49, 0.0  ;;  %v2842_v63 = vld [vmem:[%s3661_s5 + $0x1e0] sm:$0xff] }
  0xe6   :  { %v2874_v49 = vld [vmem:[%s3661_s5 + $0x2e0] sm:$0xff] }
  0xe7   :  { %v271_v60 = vpop.f32.mrf.mxu0 }
  0xe8   :  { %v272_v61 = vadd.f32 %v3038_v14, %v271_v60 }
  0xe9   :  { %1725 = vmatpush.bf16.msra.mxu2 %v2818_v62  ;;  %1741 = vmatpush.bf16.msra.mxu3 %v2823_v6  ;;  %v2853_v62 = vld [vmem:[%s3661_s5 + $0x238] sm:$0xff]  ;;  %v2852_v6 = vld [vmem:[%s3661_s5 + $0x230] sm:$0xff] }
  0xea   :  { %v345_v0 = vmax.f32 %v272_v61, 0.0  ;;  %v2807_v61 = vld [vmem:[%s3661_s5 + $0xc8] sm:$0xff] }
  0xeb   :  { %1715 = vmatpush.bf16.msrb.mxu1 %v2807_v61  ;;  %v332_v61 = vadd.f32 %v3038_v14, %v331_v59 }
  0xec   :  { %404 = vrot.lane.b32.xlu2 %v345_v0, %s2950_s26 }
  0xed   :  { %1742 = vmatpush.bf16.msra.mxu3 %v2822_v10  ;;  %v369_v10 = vmax.f32 %v332_v61, 0.0  ;;  %v2865_v61 = vld [vmem:[%s3661_s5 + $0x298] sm:$0xff] }
  0xef   :  { %v274_v4 = vpop.f32.mrf.mxu0  ;;  %1716 = vmatpush.bf16.msrb.mxu1 %v2806_v3 }
  0xf0   :  { %v275_v5 = vadd.f32 %v3038_v14, %v274_v4 }
  0xf2   :  { %v346_v9 = vmax.f32 %v275_v5, 0.0  ;;  %v2817_v5 = vld [vmem:[%s3661_s5 + $0x118] sm:$0xff] }
  0xf3   :  { %1726 = vmatpush.bf16.msra.mxu2 %v2817_v5 }
  0xf4   :  { %408 = vst.msk [vmem:[#allocation2 + $0x30] sm:$0xff] %vm370_vm2, %v346_v9  ;;  %392 = vrot.lane.b32.xlu2 %v341_v8, %s2950_s26  ;;  %v2816_v9 = vld [vmem:[%s3661_s5 + $0x110] sm:$0xff] }
  0xf7   :  { %v276_v13 = vpop.f32.mrf.mxu0  ;;  %1727 = vmatpush.bf16.msra.mxu2 %v2816_v9 }
  0xf8   :  { %v277_v16 = vadd.f32 %v3038_v14, %v276_v13 }
  0xfa   :  { %v347_v18 = vmax.f32 %v277_v16, 0.0  ;;  %v2815_v16 = vld [vmem:[%s3661_s5 + $0x108] sm:$0xff] }
  0xfb   :  { %1728 = vmatpush.bf16.msra.mxu2 %v2815_v16 }
  0xfc   :  { %410 = vrot.lane.b32.xlu2 %v347_v18, %s2950_s26 }
  0xff   :  { %v279_v21 = vpop.f32.mrf.mxu0 }
 0x100   :  { %v280_v23 = vadd.f32 %v3038_v14, %v279_v21  ;;  %v315_v21 = vadd.f32 %v3038_v14, %v314_v20 }
 0x102   :  { %v348_v25 = vmax.f32 %v280_v23, 0.0  ;;  %v2814_v23 = vld [vmem:[%s3661_s5 + $0x100] sm:$0xff]  ;;  %v362_v26 = vmax.f32 %v315_v21, 0.0 }
 0x103   :  { %1729 = vmatpush.bf16.msra.mxu2 %v2814_v23  ;;  %v2850_v21 = vld [vmem:[%s3661_s5 + $0x220] sm:$0xff] }
 0x104   :  { %414 = vst.msk [vmem:[#allocation2 + $0x38] sm:$0xff] %vm370_vm2, %v348_v25 }
 0x105   :  { %456 = vst.msk [vmem:[#allocation2 + $0x70] sm:$0xff] %vm370_vm2, %v362_v26 }
 0x107   :  { %v281_v28 = vpop.f32.mrf.mxu0 }
 0x108   :  { %v282_v30 = vadd.f32 %v3038_v14, %v281_v28 }
 0x10a   :  { %v349_v31 = vmax.f32 %v282_v30, 0.0 }
 0x10c   :  { %416 = vrot.lane.b32.xlu0 %v349_v31, %s2950_s26  ;;  %v2833_v31 = vld [vmem:[%s3661_s5 + $0x198] sm:$0xff] }
 0x10e   :  { %v374_v34 = vpop.permute.xlu1 %373 }
 0x10f   :  { %377 = vst.msk [vmem:[#allocation2] sm:$0xff] %vm376_vm3, %v374_v34  ;;  %v284_v35 = vpop.f32.mrf.mxu0  ;;  %v2832_v34 = vld [vmem:[%s3661_s5 + $0x190] sm:$0xff] }
 0x110   :  { %v285_v38 = vadd.f32 %v3038_v14, %v284_v35 }
 0x112   :  { %v350_v40 = vmax.f32 %v285_v38, 0.0 }
 0x114   :  { %420 = vst.msk [vmem:[#allocation2 + $0x40] sm:$0xff] %vm370_vm2, %v350_v40  ;;  %v330_v40 = vadd.f32 %v3038_v14, %v329_v39  ;;  %v2856_v39 = vld [vmem:[%s3661_s5 + $0x250] sm:$0xff] }
 0x116   :  { %v480_v43 = vld [vmem:[#allocation2] sm:$0xff] }
 0x117   :  { %v286_v44 = vpop.f32.mrf.mxu0  ;;  %v498_v45 = vpack.c.bf16 %v480_v43, %v480_v43  ;;  %v368_v43 = vmax.f32 %v330_v40, 0.0  ;;  %v2847_v40 = vld [vmem:[%s3661_s5 + $0x208] sm:$0xff] }
 0x118   :  { %v287_v47 = vadd.f32 %v3038_v14, %v286_v44 }
 0x119   :  { %1678 = vmatmul.bf16.vlgmr.msra.gmra.mxu1 %v498_v45  ;;  %474 = vst.msk [vmem:[#allocation2 + $0x88] sm:$0xff] %vm370_vm2, %v368_v43  ;;  %v2846_v43 = vld [vmem:[%s3661_s5 + $0x200] sm:$0xff] }
 0x11a   :  { %v351_v50 = vmax.f32 %v287_v47, 0.0  ;;  %1748 = vmatpush.bf16.msra.mxu1 %v2837_v7  ;;  %v2845_v47 = vld [vmem:[%s3661_s5 + $0x1f8] sm:$0xff] }
 0x11b   :  { %v2841_v7 = vld [vmem:[%s3661_s5 + $0x1d8] sm:$0xff] }
 0x11c   :  { %422 = vrot.lane.b32.xlu1 %v351_v50, %s2950_s26  ;;  %v2844_v50 = vld [vmem:[%s3661_s5 + $0x1f0] sm:$0xff] }
 0x11e   :  { %v381_v54 = vpop.permute.xlu0 %380  ;;  %1749 = vmatpush.bf16.msra.mxu1 %v2836_v11 }
 0x11f   :  { %383 = vst.msk [vmem:[#allocation2 + $0x8] sm:$0xff] %vm376_vm3, %v381_v54  ;;  %v289_v55 = vpop.f32.mrf.mxu0 }
 0x120   :  { %v290_v57 = vadd.f32 %v3038_v14, %v289_v55 }
 0x122   :  { %v352_v60 = vmax.f32 %v290_v57, 0.0  ;;  %1750 = vmatpush.bf16.msra.mxu1 %v2835_v17  ;;  %v2840_v17 = vld [vmem:[%s3661_s5 + $0x1d0] sm:$0xff] }
 0x124   :  { %426 = vst.msk [vmem:[#allocation2 + $0x48] sm:$0xff] %vm370_vm2, %v352_v60 }
 0x126   :  { %v481_v0 = vld [vmem:[#allocation2 + $0x8] sm:$0xff]  ;;  %1751 = vmatpush.bf16.msra.mxu1 %v2834_v24 }
 0x127   :  { %v291_v1 = vpop.f32.mrf.mxu0  ;;  %v499_v2 = vpack.c.bf16 %v481_v0, %v481_v0 }
 0x128   :  { %v292_v4 = vadd.f32 %v3038_v14, %v291_v1 }
 0x129   :  { %1691 = vmatmul.bf16.vlgmr.msrb.gmra.mxu2 %v499_v2  ;;  %v2861_v2 = vld [vmem:[%s3661_s5 + $0x278] sm:$0xff] }
 0x12a   :  { %v353_v8 = vmax.f32 %v292_v4, 0.0  ;;  %1752 = vmatpush.bf16.msra.mxu1 %v2833_v31  ;;  %1761 = vmatpush.bf16.msrb.mxu2 %v2845_v47  ;;  %v2857_v31 = vld [vmem:[%s3661_s5 + $0x258] sm:$0xff]  ;;  %v2875_v47 = vld [vmem:[%s3661_s5 + $0x2e8] sm:$0xff] }
 0x12c   :  { %428 = vrot.lane.b32.xlu2 %v353_v8, %s2950_s26 }
 0x12e   :  { %v387_v12 = vpop.permute.xlu0 %386  ;;  %1753 = vmatpush.bf16.msra.mxu1 %v2832_v34  ;;  %1762 = vmatpush.bf16.msrb.mxu2 %v2844_v50 }
 0x12f   :  { %389 = vst.msk [vmem:[#allocation2 + $0x10] sm:$0xff] %vm376_vm3, %v387_v12  ;;  %v294_v13 = vpop.f32.mrf.mxu0  ;;  %v2860_v12 = vld [vmem:[%s3661_s5 + $0x270] sm:$0xff] }
 0x130   :  { %v295_v15 = vadd.f32 %v3038_v14, %v294_v13  ;;  %v319_v13 = vpop.f32.mrf.mxu2 }
 0x131   :  { %v320_v16 = vadd.f32 %v3038_v14, %v319_v13  ;;  %v2879_v13 = vld [vmem:[%s3661_s5 + $0x308] sm:$0xff] }
 0x132   :  { %v354_v18 = vmax.f32 %v295_v15, 0.0  ;;  %1754 = vmatpush.bf16.msra.mxu1 %v2831_v37  ;;  %1763 = vmatpush.bf16.msrb.mxu2 %v2843_v56  ;;  %v2851_v15 = vld [vmem:[%s3661_s5 + $0x228] sm:$0xff]  ;;  %v2848_v37 = vld [vmem:[%s3661_s5 + $0x210] sm:$0xff] }
 0x133   :  { %v364_v19 = vmax.f32 %v320_v16, 0.0  ;;  %v2872_v56 = vld [vmem:[%s3661_s5 + $0x2d0] sm:$0xff]  ;;  %v2893_v16 = vld [vmem:[%s3661_s5 + $0x378] sm:$0xff] }
 0x134   :  { %432 = vst.msk [vmem:[#allocation2 + $0x50] sm:$0xff] %vm370_vm2, %v354_v18  ;;  %v2859_v18 = vld [vmem:[%s3661_s5 + $0x268] sm:$0xff] }
 0x135   :  { %462 = vst.msk [vmem:[#allocation2 + $0x78] sm:$0xff] %vm370_vm2, %v364_v19  ;;  %v2899_v19 = vld [vmem:[%s3661_s5 + $0x3a8] sm:$0xff] }
 0x136   :  { %v482_v25 = vld [vmem:[#allocation2 + $0x10] sm:$0xff]  ;;  %1755 = vmatpush.bf16.msra.mxu1 %v2830_v41  ;;  %1764 = vmatpush.bf16.msrb.mxu2 %v2842_v63  ;;  %v327_v41 = vadd.f32 %v3038_v14, %v3289_v33  ;;  %v2870_v63 = vld [vmem:[%s3661_s5 + $0x2c0] sm:$0xff] }
 0x137   :  { %v296_v28 = vpop.f32.mrf.mxu0  ;;  %v500_v29 = vpack.c.bf16 %v482_v25, %v482_v25  ;;  %v2858_v25 = vld [vmem:[%s3661_s5 + $0x260] sm:$0xff]  ;;  %v2876_v33 = vld [vmem:[%s3661_s5 + $0x2f0] sm:$0xff] }
 0x138   :  { %v297_v30 = vadd.f32 %v3038_v14, %v296_v28  ;;  %v321_v26 = vpop.f32.mrf.mxu2 }
 0x139   :  { %1704 = vmatmul.bf16.vlgmr.msrb.gmra.mxu3 %v500_v29  ;;  %v322_v29 = vadd.f32 %v3038_v14, %v321_v26  ;;  %v2896_v26 = vld [vmem:[%s3661_s5 + $0x390] sm:$0xff] }
 0x13a   :  { %v355_v32 = vmax.f32 %v297_v30, 0.0  ;;  %1774 = vmatpush.bf16.msrb.mxu3 %v2853_v62  ;;  %1765 = vmatpush.bf16.msrb.mxu2 %v2841_v7  ;;  %v2838_v30 = vld [vmem:[%s3661_s5 + $0x1c0] sm:$0xff]  ;;  %v2871_v62 = vld [vmem:[%s3661_s5 + $0x2c8] sm:$0xff] }
 0x13b   :  { %v2862_v7 = vld [vmem:[%s3661_s5 + $0x280] sm:$0xff] }
 0x13c   :  { %434 = vrot.lane.b32.xlu0 %v355_v32, %s2950_s26  ;;  %v365_v32 = vmax.f32 %v322_v29, 0.0 }
 0x13e   :  { %1775 = vmatpush.bf16.msrb.mxu3 %v2852_v6  ;;  %1766 = vmatpush.bf16.msrb.mxu2 %v2840_v17  ;;  %v2881_v6 = vld [vmem:[%s3661_s5 + $0x318] sm:$0xff]  ;;  %v2878_v17 = vld [vmem:[%s3661_s5 + $0x300] sm:$0xff] }
 0x13f   :  { %v299_v35 = vpop.f32.mrf.mxu0 }
 0x140   :  { %v300_v36 = vadd.f32 %v3038_v14, %v299_v35 }
 0x142   :  { %v356_v38 = vmax.f32 %v300_v36, 0.0  ;;  %1776 = vmatpush.bf16.msrb.mxu3 %v2851_v15  ;;  %1767 = vmatpush.bf16.msrb.mxu2 %v2839_v22  ;;  %v2900_v15 = vld [vmem:[%s3661_s5 + $0x3b0] sm:$0xff]  ;;  %v2891_v22 = vld [vmem:[%s3661_s5 + $0x368] sm:$0xff] }
 0x144   :  { %438 = vst.msk [vmem:[#allocation2 + $0x58] sm:$0xff] %vm370_vm2, %v356_v38 }
 0x146   :  { %v405_v42 = vpop.permute.xlu2 %404  ;;  %1777 = vmatpush.bf16.msrb.mxu3 %v2850_v21  ;;  %1768 = vmatpush.bf16.msrb.mxu2 %v2838_v30  ;;  %v2898_v21 = vld [vmem:[%s3661_s5 + $0x3a0] sm:$0xff] }
 0x147   :  { %407 = vst.msk [vmem:[#allocation2 + $0x28] sm:$0xff] %vm376_vm3, %v405_v42  ;;  %v301_v44 = vpop.f32.mrf.mxu0  ;;  %v2855_v42 = vld [vmem:[%s3661_s5 + $0x248] sm:$0xff] }
 0x148   :  { %v302_v45 = vadd.f32 %v3038_v14, %v301_v44  ;;  %v2877_v44 = vld [vmem:[%s3661_s5 + $0x2f8] sm:$0xff] }
 0x14a   :  { %v357_v48 = vmax.f32 %v302_v45, 0.0  ;;  %1778 = vmatpush.bf16.msrb.mxu3 %v2849_v27  ;;  %v367_v45 = vmax.f32 %v327_v41, 0.0  ;;  %v2889_v27 = vld [vmem:[%s3661_s5 + $0x358] sm:$0xff] }
 0x14c   :  { %440 = vrot.lane.b32.xlu1 %v357_v48, %s2950_s26  ;;  %v2868_v48 = vld [vmem:[%s3661_s5 + $0x2b0] sm:$0xff] }
 0x14e   :  { %v393_v51 = vpop.permute.xlu2 %392  ;;  %v399_v52 = vpop.permute.xlu1 %398  ;;  %v485_v53 = vld [vmem:[#allocation2 + $0x28] sm:$0xff]  ;;  %1779 = vmatpush.bf16.msrb.mxu3 %v2848_v37  ;;  %v2894_v37 = vld [vmem:[%s3661_s5 + $0x380] sm:$0xff] }
 0x14f   :  { %395 = vst.msk [vmem:[#allocation2 + $0x18] sm:$0xff] %vm376_vm3, %v393_v51  ;;  %v304_v54 = vpop.f32.mrf.mxu0  ;;  %v503_v55 = vpack.c.bf16 %v485_v53, %v485_v53  ;;  %v2885_v51 = vld [vmem:[%s3661_s5 + $0x338] sm:$0xff] }
 0x150   :  { %401 = vst.msk [vmem:[#allocation2 + $0x20] sm:$0xff] %vm376_vm3, %v399_v52  ;;  %v305_v57 = vadd.f32 %v3038_v14, %v304_v54  ;;  %v2867_v52 = vld [vmem:[%s3661_s5 + $0x2a8] sm:$0xff]  ;;  %v2873_v53 = vld [vmem:[%s3661_s5 + $0x2d8] sm:$0xff]  ;;  %v2884_v54 = vld [vmem:[%s3661_s5 + $0x330] sm:$0xff] }
 0x151   :  { %1743 = vmatmul.bf16.vlgmr.msra.gmra.mxu3 %v503_v55  ;;  %v2866_v55 = vld [vmem:[%s3661_s5 + $0x2a0] sm:$0xff] }
 0x152   :  { %v358_v60 = vmax.f32 %v305_v57, 0.0  ;;  %1780 = vmatpush.bf16.msrb.mxu3 %v2847_v40  ;;  %v2883_v57 = vld [vmem:[%s3661_s5 + $0x328] sm:$0xff] }
 0x153   :  { %v2907_v40 = vld [vmem:[%s3661_s5 + $0x3e8] sm:$0xff] }
 0x154   :  { %444 = vst.msk [vmem:[#allocation2 + $0x60] sm:$0xff] %vm370_vm2, %v358_v60  ;;  %458 = vrot.lane.b32.xlu1 %v363_v58, %s2950_s26 }
 0x156   :  { %v411_v0 = vpop.permute.xlu2 %410  ;;  %v483_v1 = vld [vmem:[#allocation2 + $0x18] sm:$0xff]  ;;  %1781 = vmatpush.bf16.msrb.mxu3 %v2846_v43 }
 0x157   :  { %413 = vst.msk [vmem:[#allocation2 + $0x30] sm:$0xff] %vm376_vm3, %v411_v0  ;;  %v306_v3 = vpop.f32.mrf.mxu0  ;;  %v501_v4 = vpack.c.bf16 %v483_v1, %v483_v1  ;;  %v484_v5 = vld [vmem:[#allocation2 + $0x20] sm:$0xff]  ;;  %v2864_v0 = vld [vmem:[%s3661_s5 + $0x290] sm:$0xff] }
 0x158   :  { %v307_v8 = vadd.f32 %v3038_v14, %v306_v3  ;;  %v502_v9 = vpack.c.bf16 %v484_v5, %v484_v5  ;;  %v2882_v1 = vld [vmem:[%s3661_s5 + $0x320] sm:$0xff]  ;;  %v2863_v5 = vld [vmem:[%s3661_s5 + $0x288] sm:$0xff] }
 0x159   :  { %1717 = vmatmul.bf16.vlgmr.msrb.gmra.mxu1 %v501_v4 }
 0x15a   :  { %v359_v11 = vmax.f32 %v307_v8, 0.0  ;;  %1730 = vmatmul.bf16.vlgmr.msra.gmra.mxu2 %v502_v9  ;;  %1787 = vmatpush.bf16.msrb.mxu1 %v2861_v2  ;;  %v2880_v8 = vld [vmem:[%s3661_s5 + $0x310] sm:$0xff] }
 0x15b   :  { %1813 = vmatpush.bf16.msra.mxu3 %v2877_v44  ;;  %1800 = vmatpush.bf16.msra.mxu2 %v2869_v46  ;;  %v2886_v44 = vld [vmem:[%s3661_s5 + $0x340] sm:$0xff] }
 0x15c   :  { %446 = vrot.lane.b32.xlu2 %v359_v11, %s2950_s26  ;;  %476 = vrot.lane.b32.xlu1 %v369_v10, %s2950_s26  ;;  %v2901_v11 = vld [vmem:[%s3661_s5 + $0x3b8] sm:$0xff] }
 0x15e   :  { %1788 = vmatpush.bf16.msrb.mxu1 %v2860_v12  ;;  %v486_v28 = vld [vmem:[#allocation2 + $0x30] sm:$0xff] }
 0x15f   :  { %v309_v20 = vpop.f32.mrf.mxu0  ;;  %v504_v35 = vpack.c.bf16 %v486_v28, %v486_v28  ;;  %1814 = vmatpush.bf16.msra.mxu3 %v2876_v33  ;;  %1801 = vmatpush.bf16.msra.mxu2 %v2868_v48  ;;  %v2909_v28 = vld [vmem:[%s3661_s5 + $0x3f8] sm:$0xff]  ;;  %v2916_v48 = vld [vmem:[%s3661_s5 + $0x430] sm:$0xff] }
 0x160   :  { %v310_v23 = vadd.f32 %v3038_v14, %v309_v20  ;;  %v2892_v20 = vld [vmem:[%s3661_s5 + $0x370] sm:$0xff] }
 0x162   :  { %v360_v24 = vmax.f32 %v310_v23, 0.0  ;;  %1789 = vmatpush.bf16.msrb.mxu1 %v2859_v18  ;;  %v2897_v23 = vld [vmem:[%s3661_s5 + $0x398] sm:$0xff] }
 0x163   :  { %1815 = vmatpush.bf16.msra.mxu3 %v2875_v47  ;;  %1802 = vmatpush.bf16.msra.mxu2 %v2867_v52  ;;  %v2905_v47 = vld [vmem:[%s3661_s5 + $0x3d8] sm:$0xff]  ;;  %v2904_v52 = vld [vmem:[%s3661_s5 + $0x3d0] sm:$0xff] }
 0x164   :  { %450 = vst.msk [vmem:[#allocation2 + $0x68] sm:$0xff] %vm370_vm2, %v360_v24  ;;  %464 = vrot.lane.b32.xlu2 %v365_v32, %s2950_s26  ;;  %v2945_v24 = vld [vmem:[%s3659_s4] ss:$0 sm:$0xff] }
 0x166   :  { %1790 = vmatpush.bf16.msrb.mxu1 %v2858_v25  ;;  %v2890_v25 = vld [vmem:[%s3661_s5 + $0x360] sm:$0xff] }
 0x167   :  { %v311_v34 = vpop.f32.mrf.mxu0  ;;  %1816 = vmatpush.bf16.msra.mxu3 %v2874_v49  ;;  %1803 = vmatpush.bf16.msra.mxu2 %v2866_v55 }
 0x168   :  { %v312_v36 = vadd.f32 %v3038_v14, %v311_v34  ;;  %v2854_v14 = vld [vmem:[%s3661_s5 + $0x240] sm:$0xff]  ;;  %v2895_v34 = vld [vmem:[%s3661_s5 + $0x388] sm:$0xff] }
 0x169   :  { %1756 = vmatmul.bf16.vlgmr.msra.gmra.mxu1 %v504_v35  ;;  %v2888_v35 = vld [vmem:[%s3661_s5 + $0x350] sm:$0xff] }
 0x16a   :  { %v361_v38 = vmax.f32 %v312_v36, 0.0  ;;  %1791 = vmatpush.bf16.msrb.mxu1 %v2857_v31  ;;  %v2908_v36 = vld [vmem:[%s3661_s5 + $0x3f0] sm:$0xff] }
 0x16b   :  { %1817 = vmatpush.bf16.msra.mxu3 %v2873_v53  ;;  %1804 = vmatpush.bf16.msra.mxu2 %v2865_v61  ;;  %v2915_v53 = vld [vmem:[%s3661_s5 + $0x428] sm:$0xff] }
 0x16c   :  { %452 = vrot.lane.b32.xlu0 %v361_v38, %s2950_s26 }
 0x16e   :  { %1792 = vmatpush.bf16.msrb.mxu1 %v2856_v39  ;;  %v2887_v39 = vld [vmem:[%s3661_s5 + $0x348] sm:$0xff] }
 0x16f   :  { %1818 = vmatpush.bf16.msra.mxu3 %v2872_v56  ;;  %1805 = vmatpush.bf16.msra.mxu2 %v2864_v0  ;;  %v2903_v56 = vld [vmem:[%s3661_s5 + $0x3c8] sm:$0xff]  ;;  %v2924_v0 = vld [vmem:[%s3661_s5 + $0x470] sm:$0xff] }
 0x172   :  { %1793 = vmatpush.bf16.msrb.mxu1 %v2855_v42 }
 0x173   :  { %1819 = vmatpush.bf16.msra.mxu3 %v2871_v62  ;;  %1806 = vmatpush.bf16.msra.mxu2 %v2863_v5  ;;  %v2902_v62 = vld [vmem:[%s3661_s5 + $0x3c0] sm:$0xff] }
 0x174   :  { %470 = vrot.lane.b32.xlu0 %v367_v45, %s2950_s26  ;;  %v2906_v45 = vld [vmem:[%s3661_s5 + $0x3e0] sm:$0xff] }
 0x176   :  { %1794 = vmatpush.bf16.msrb.mxu1 %v2854_v14  ;;  %v2917_v14 = vld [vmem:[%s3661_s5 + $0x438] sm:$0xff] }
 0x177   :  { %1820 = vmatpush.bf16.msra.mxu3 %v2870_v63  ;;  %1807 = vmatpush.bf16.msra.mxu2 %v2862_v7  ;;  %v2913_v63 = vld [vmem:[%s3661_s5 + $0x418] sm:$0xff]  ;;  %v2922_v7 = vld [vmem:[%s3661_s5 + $0x460] sm:$0xff] }
 0x17a   :  { %1826 = vmatpush.bf16.msra.mxu1 %v2885_v51 }
 0x17e   :  { %v417_v50 = vpop.permute.xlu0 %416  ;;  %1827 = vmatpush.bf16.msra.mxu1 %v2884_v54 }
 0x17f   :  { %419 = vst.msk [vmem:[#allocation2 + $0x38] sm:$0xff] %vm376_vm3, %v417_v50 }
 0x182   :  { %1828 = vmatpush.bf16.msra.mxu1 %v2883_v57  ;;  %v2914_v57 = vld [vmem:[%s3661_s5 + $0x420] sm:$0xff] }
 0x186   :  { %v429_v58 = vpop.permute.xlu2 %428  ;;  %v487_v59 = vld [vmem:[#allocation2 + $0x38] sm:$0xff]  ;;  %1829 = vmatpush.bf16.msra.mxu1 %v2882_v1 }
 0x187   :  { %431 = vst.msk [vmem:[#allocation2 + $0x48] sm:$0xff] %vm376_vm3, %v429_v58  ;;  %v505_v60 = vpack.c.bf16 %v487_v59, %v487_v59  ;;  %v2925_v59 = vld [vmem:[%s3661_s5 + $0x478] sm:$0xff] }
 0x189   :  { %1769 = vmatmul.bf16.vlgmr.msrb.gmra.mxu2 %v505_v60 }
 0x18a   :  { %1830 = vmatpush.bf16.msra.mxu1 %v2881_v6  ;;  %1839 = vmatpush.bf16.msrb.mxu2 %v2893_v16  ;;  %v2911_v6 = vld [vmem:[%s3661_s5 + $0x408] sm:$0xff]  ;;  %v2920_v16 = vld [vmem:[%s3661_s5 + $0x450] sm:$0xff] }
 0x18e   :  { %v423_v2 = vpop.permute.xlu1 %422  ;;  %v489_v3 = vld [vmem:[#allocation2 + $0x48] sm:$0xff]  ;;  %1831 = vmatpush.bf16.msra.mxu1 %v2880_v8  ;;  %1840 = vmatpush.bf16.msrb.mxu2 %v2892_v20 }
 0x18f   :  { %425 = vst.msk [vmem:[#allocation2 + $0x40] sm:$0xff] %vm376_vm3, %v423_v2  ;;  %v507_v4 = vpack.c.bf16 %v489_v3, %v489_v3  ;;  %v2912_v3 = vld [vmem:[%s3661_s5 + $0x410] sm:$0xff] }
 0x191   :  { %1795 = vmatmul.bf16.vlgmr.msrb.gmra.mxu1 %v507_v4  ;;  %v2923_v4 = vld [vmem:[%s3661_s5 + $0x468] sm:$0xff] }
 0x192   :  { %1832 = vmatpush.bf16.msra.mxu1 %v2879_v13  ;;  %1841 = vmatpush.bf16.msrb.mxu2 %v2891_v22  ;;  %v2921_v13 = vld [vmem:[%s3661_s5 + $0x458] sm:$0xff]  ;;  %v2919_v22 = vld [vmem:[%s3661_s5 + $0x448] sm:$0xff] }
 0x196   :  { %v1679_v9 = vpop.f32.mrf.mxu1  ;;  %v488_v10 = vld [vmem:[#allocation2 + $0x40] sm:$0xff]  ;;  %1833 = vmatpush.bf16.msra.mxu1 %v2878_v17  ;;  %1842 = vmatpush.bf16.msrb.mxu2 %v2890_v25 }
 0x197   :  { %v506_v12 = vpack.c.bf16 %v488_v10, %v488_v10  ;;  %v1680_v29 = vadd.f32 %v2945_v24, %v1679_v9  ;;  %v2910_v9 = vld [vmem:[%s3661_s5 + $0x400] sm:$0xff] }
 0x198   :  { %v2918_v24 = vld [vmem:[%s3661_s5 + $0x440] sm:$0xff]  ;;  %s2952_s5 = smov 127  }
 0x199   :  { %1782 = vmatmul.bf16.vlgmr.msrb.gmra.mxu3 %v506_v12 }
 0x19a   :  { %1852 = vmatpush.bf16.msrb.mxu3 %v2901_v11  ;;  %1865 = vmatpush.bf16.msrb.mxu1 %v2909_v28 }
 0x19b   :  { %1843 = vmatpush.bf16.msrb.mxu2 %v2889_v27 }
 0x19e   :  { %v1681_v18 = vpop.f32.mrf.mxu1  ;;  %1853 = vmatpush.bf16.msrb.mxu3 %v2900_v15  ;;  %1866 = vmatpush.bf16.msrb.mxu1 %v2908_v36 }
 0x19f   :  { %1844 = vmatpush.bf16.msrb.mxu2 %v2888_v35 }
 0x1a2   :  { %1854 = vmatpush.bf16.msrb.mxu3 %v2899_v19  ;;  %1867 = vmatpush.bf16.msrb.mxu1 %v2907_v40 }
 0x1a3   :  { %1845 = vmatpush.bf16.msrb.mxu2 %v2887_v39 }
 0x1a6   :  { %1855 = vmatpush.bf16.msrb.mxu3 %v2898_v21  ;;  %1868 = vmatpush.bf16.msrb.mxu1 %v2906_v45 }
 0x1a7   :  { %1846 = vmatpush.bf16.msrb.mxu2 %v2886_v44 }
 0x1aa   :  { %1856 = vmatpush.bf16.msrb.mxu3 %v2897_v23  ;;  %1869 = vmatpush.bf16.msrb.mxu1 %v2905_v47  ;;  %v2933_v47 = vld [vmem:[%s3662_s6 + $0x38] sm:$0xff] }
 0x1ac   :  { %v1692_v30 = vpop.f32.mrf.mxu2 }
 0x1ad   :  { %v1693_v31 = vadd.f32 %v1692_v30, %v1680_v29 }
 0x1ae   :  { %v435_v32 = vpop.permute.xlu0 %434  ;;  %1857 = vmatpush.bf16.msrb.mxu3 %v2896_v26  ;;  %1870 = vmatpush.bf16.msrb.mxu1 %v2904_v52 }
 0x1af   :  { %437 = vst.msk [vmem:[#allocation2 + $0x50] sm:$0xff] %vm376_vm3, %v435_v32 }
 0x1b2   :  { %1858 = vmatpush.bf16.msrb.mxu3 %v2895_v34  ;;  %1871 = vmatpush.bf16.msrb.mxu1 %v2903_v56 }
 0x1b4   :  { %v1694_v38 = vpop.f32.mrf.mxu2 }
 0x1b6   :  { %v447_v41 = vpop.permute.xlu2 %446  ;;  %v490_v42 = vld [vmem:[#allocation2 + $0x50] sm:$0xff]  ;;  %1859 = vmatpush.bf16.msrb.mxu3 %v2894_v37  ;;  %1872 = vmatpush.bf16.msrb.mxu1 %v2902_v62 }
 0x1b7   :  { %449 = vst.msk [vmem:[#allocation2 + $0x60] sm:$0xff] %vm376_vm3, %v447_v41  ;;  %v508_v43 = vpack.c.bf16 %v490_v42, %v490_v42 }
 0x1b9   :  { %1808 = vmatmul.bf16.vlgmr.msra.gmra.mxu2 %v508_v43 }
 0x1ba   :  { %1878 = vmatpush.bf16.msra.mxu2 %v2917_v14 }
 0x1bc   :  { %v1705_v33 = vpop.f32.mrf.mxu3 }
 0x1bd   :  { %v1706_v46 = vadd.f32 %v1705_v33, %v1693_v31 }
 0x1be   :  { %v441_v49 = vpop.permute.xlu1 %440  ;;  %v492_v50 = vld [vmem:[#allocation2 + $0x60] sm:$0xff]  ;;  %1879 = vmatpush.bf16.msra.mxu2 %v2916_v48  ;;  %v465_v54 = vpop.permute.xlu2 %464 }
 0x1bf   :  { %443 = vst.msk [vmem:[#allocation2 + $0x58] sm:$0xff] %vm376_vm3, %v441_v49  ;;  %v510_v51 = vpack.c.bf16 %v492_v50, %v492_v50  ;;  %v2932_v49 = vld [vmem:[%s3662_s6 + $0x30] sm:$0xff] }
 0x1c0   :  { %467 = vst.msk [vmem:[#allocation2 + $0x78] sm:$0xff] %vm376_vm3, %v465_v54 }
 0x1c1   :  { %1834 = vmatmul.bf16.vlgmr.msra.gmra.mxu1 %v510_v51  ;;  %v2931_v51 = vld [vmem:[%s3662_s6 + $0x28] sm:$0xff] }
 0x1c2   :  { %1880 = vmatpush.bf16.msra.mxu2 %v2915_v53  ;;  %1972 = vmatpush.bf16.msra.mxu1 %v2933_v47  ;;  %v2930_v53 = vld [vmem:[%s3662_s6 + $0x20] sm:$0xff] }
 0x1c4   :  { %v1707_v55 = vpop.f32.mrf.mxu3 }
 0x1c5   :  { %v2929_v55 = vld [vmem:[%s3662_s6 + $0x18] sm:$0xff] }
 0x1c6   :  { %v491_v58 = vld [vmem:[#allocation2 + $0x58] sm:$0xff]  ;;  %v459_v60 = vpop.permute.xlu1 %458  ;;  %1881 = vmatpush.bf16.msra.mxu2 %v2914_v57  ;;  %1973 = vmatpush.bf16.msra.mxu1 %v2932_v49  ;;  %v2928_v57 = vld [vmem:[%s3662_s6 + $0x10] sm:$0xff] }
 0x1c7   :  { %v509_v61 = vpack.c.bf16 %v491_v58, %v491_v58  ;;  %461 = vst.msk [vmem:[#allocation2 + $0x70] sm:$0xff] %vm376_vm3, %v459_v60  ;;  %v495_v1 = vld [vmem:[#allocation2 + $0x78] sm:$0xff]  ;;  %v2926_v60 = vld [vmem:[%s3662_s6] sm:$0xff] }
 0x1c8   :  { %v513_v2 = vpack.c.bf16 %v495_v1, %v495_v1 }
 0x1c9   :  { %1821 = vmatmul.bf16.vlgmr.msra.gmra.mxu3 %v509_v61 }
 0x1ca   :  { %1891 = vmatpush.bf16.msra.mxu3 %v2925_v59  ;;  %1882 = vmatpush.bf16.msra.mxu2 %v2913_v63  ;;  %v2927_v59 = vld [vmem:[%s3662_s6 + $0x8] sm:$0xff] }
 0x1cb   :  { %1974 = vmatpush.bf16.msra.mxu1 %v2931_v51 }
 0x1ce   :  { %1892 = vmatpush.bf16.msra.mxu3 %v2924_v0  ;;  %v477_v5 = vpop.permute.xlu1 %476  ;;  %1883 = vmatpush.bf16.msra.mxu2 %v2912_v3  ;;  %v494_v8 = vld [vmem:[#allocation2 + $0x70] sm:$0xff] }
 0x1cf   :  { %479 = vst.msk [vmem:[#allocation2 + $0x88] sm:$0xff] %vm376_vm3, %v477_v5  ;;  %v512_v11 = vpack.c.bf16 %v494_v8, %v494_v8  ;;  %1975 = vmatpush.bf16.msra.mxu1 %v2930_v53 }
 0x1d1   :  { %1873 = vmatmul.bf16.vlgmr.msrb.gmra.mxu1 %v513_v2 }
 0x1d2   :  { %1893 = vmatpush.bf16.msra.mxu3 %v2923_v4  ;;  %1884 = vmatpush.bf16.msra.mxu2 %v2911_v6 }
 0x1d3   :  { %1976 = vmatpush.bf16.msra.mxu1 %v2929_v55 }
 0x1d4   :  { %v1744_v10 = vpop.f32.mrf.mxu3 }
 0x1d6   :  { %v1718_v12 = vpop.f32.mrf.mxu1  ;;  %1894 = vmatpush.bf16.msra.mxu3 %v2922_v7  ;;  %1885 = vmatpush.bf16.msra.mxu2 %v2910_v9  ;;  %v497_v25 = vld [vmem:[#allocation2 + $0x88] sm:$0xff] }
 0x1d7   :  { %v1719_v15 = vadd.f32 %v1718_v12, %v1706_v46  ;;  %v515_v27 = vpack.c.bf16 %v497_v25, %v497_v25  ;;  %1977 = vmatpush.bf16.msra.mxu1 %v2928_v57 }
 0x1d9   :  { %1860 = vmatmul.bf16.vlgmr.msrb.gmra.mxu3 %v512_v11 }
 0x1da   :  { %1895 = vmatpush.bf16.msra.mxu3 %v2921_v13 }
 0x1db   :  { %1978 = vmatpush.bf16.msra.mxu1 %v2927_v59 }
 0x1dc   :  { %v1746_v17 = vpop.f32.mrf.mxu3 }
 0x1dd   :  { %v1731_v18 = vpop.f32.mrf.mxu2 }
 0x1de   :  { %v1732_v19 = vadd.f32 %v1731_v18, %v1719_v15  ;;  %v453_v20 = vpop.permute.xlu0 %452  ;;  %v1720_v21 = vpop.f32.mrf.mxu1  ;;  %1896 = vmatpush.bf16.msra.mxu3 %v2920_v16  ;;  %v2946_v15 = vld [vmem:[%s3659_s4 + $0x1] ss:$0 sm:$0xff]  ;;  %v2947_v18 = vld [vmem:[%s3659_s4 + $0x5] ss:$0 sm:$0xff] }
 0x1df   :  { %455 = vst.msk [vmem:[#allocation2 + $0x68] sm:$0xff] %vm376_vm3, %v453_v20  ;;  %1979 = vmatpush.bf16.msra.mxu1 %v2926_v60 }
 0x1e0   :  { %v1745_v23 = vadd.f32 %v1744_v10, %v1732_v19  ;;  %v2948_v19 = vld [vmem:[%s3659_s4 + $0x4] ss:$0 sm:$0xff] }
 0x1e2   :  { %1897 = vmatpush.bf16.msra.mxu3 %v2919_v22 }
 0x1e5   :  { %v1733_v26 = vpop.f32.mrf.mxu2 }
 0x1e6   :  { %v471_v28 = vpop.permute.xlu0 %470  ;;  %v1757_v29 = vpop.f32.mrf.mxu1  ;;  %1898 = vmatpush.bf16.msra.mxu3 %v2918_v24  ;;  %v493_v30 = vld [vmem:[#allocation2 + $0x68] sm:$0xff]  ;;  %v2949_v26 = vld [vmem:[%s3659_s4 + $0x3] ss:$0 sm:$0xff] }
 0x1e7   :  { %473 = vst.msk [vmem:[#allocation2 + $0x80] sm:$0xff] %vm376_vm3, %v471_v28  ;;  %v1758_v31 = vadd.f32 %v1757_v29, %v1745_v23  ;;  %v511_v32 = vpack.c.bf16 %v493_v30, %v493_v30 }
 0x1e9   :  { %1847 = vmatmul.bf16.vlgmr.msrb.gmra.mxu2 %v511_v32  ;;  %1899 = vmatmul.bf16.vlgmr.msra.gmra.mxu3 %v515_v27 }
 0x1ee   :  { %v1759_v34 = vpop.f32.mrf.mxu1  ;;  %v496_v35 = vld [vmem:[#allocation2 + $0x80] sm:$0xff] }
 0x1ef   :  { %v514_v36 = vpack.c.bf16 %v496_v35, %v496_v35  ;;  %v2006_v34 = vld [vmem:[%s3663_s1] sm:$0xff] }
 0x1f9   :  { %1886 = vmatmul.bf16.vlgmr.msra.gmra.mxu2 %v514_v36 }
 0x20c   :  { %v1770_v37 = vpop.f32.mrf.mxu2 }
 0x20d   :  { %v1771_v38 = vadd.f32 %v1770_v37, %v1758_v31 }
 0x20e   :  { %v1796_v39 = vpop.f32.mrf.mxu1 }
 0x214   :  { %v1772_v40 = vpop.f32.mrf.mxu2 }
 0x216   :  { %v1798_v41 = vpop.f32.mrf.mxu1 }
 0x21c   :  { %v1783_v42 = vpop.f32.mrf.mxu3 }
 0x21d   :  { %v1784_v43 = vadd.f32 %v1783_v42, %v1771_v38 }
 0x21f   :  { %v1797_v44 = vadd.f32 %v1796_v39, %v1784_v43 }
 0x224   :  { %v1785_v45 = vpop.f32.mrf.mxu3 }
 0x23c   :  { %v1809_v14 = vpop.f32.mrf.mxu2 }
 0x23d   :  { %v1810_v62 = vadd.f32 %v1809_v14, %v1797_v44  ;;  %v2022_v44 = vstv %s2008_s20 }
 0x23e   :  { %v1835_v33 = vpop.f32.mrf.mxu1 }
 0x244   :  { %v1811_v46 = vpop.f32.mrf.mxu2 }
 0x246   :  { %v1837_v48 = vpop.f32.mrf.mxu1 }
 0x24c   :  { %v1822_v50 = vpop.f32.mrf.mxu3 }
 0x24d   :  { %v1823_v1 = vadd.f32 %v1822_v50, %v1810_v62 }
 0x24e   :  { %v1874_v52 = vpop.f32.mrf.mxu1 }
 0x24f   :  { %v1836_v2 = vadd.f32 %v1835_v33, %v1823_v1 }
 0x254   :  { %v1824_v54 = vpop.f32.mrf.mxu3 }
 0x256   :  { %v1876_v56 = vpop.f32.mrf.mxu1 }
 0x25c   :  { %v1861_v58 = vpop.f32.mrf.mxu3 }
 0x264   :  { %v1863_v61 = vpop.f32.mrf.mxu3 }
 0x26c   :  { %v1848_v63 = vpop.f32.mrf.mxu2  ;;  %v1900_v0 = vpop.f32.mrf.mxu3 }
 0x26d   :  { %v1849_v3 = vadd.f32 %v1848_v63, %v1836_v2 }
 0x26f   :  { %v1862_v6 = vadd.f32 %v1861_v58, %v1849_v3 }
 0x271   :  { %v1875_v7 = vadd.f32 %v1874_v52, %v1862_v6 }
 0x274   :  { %v1850_v4 = vpop.f32.mrf.mxu2  ;;  %v1902_v5 = vpop.f32.mrf.mxu3 }
 0x27c   :  { %v1887_v8 = vpop.f32.mrf.mxu2 }
 0x27d   :  { %v1888_v9 = vadd.f32 %v1887_v8, %v1875_v7 }
 0x27f   :  { %v1901_v10 = vadd.f32 %v1900_v0, %v1888_v9 }
 0x281   :  { %v1904_v11 = vmax.f32 %v1901_v10, 0.0 }
 0x283   :  { %v1905_v12 = vpack.c.bf16 %v1904_v11, %v1904_v11 }
 0x284   :  { %v1889_v13 = vpop.f32.mrf.mxu2 }
 0x285   :  { %1980 = vmatmul.bf16.vlgmr.msra.gmra.mxu1 %v1905_v12 }
 0x302   :  { %v1981_v16 = vpop.f32.mrf.mxu1 }
 0x303   :  { %v1982_v17 = vadd.f32 %v2946_v15, %v1981_v16 }
 0x305   :  { %v1985_v20 = vmax.f32 %v1982_v17, 0.0 }
 0x307   :  { %v1997_v21 = vmul.f32 %v2947_v18, %v1985_v20  ;;  %v1988_v22 = vmul.f32 %v2948_v19, %v1985_v20 }
 0x309   :  { %v1998_v23 = vsel %vm370_vm2, %v1997_v21, 0.0  ;;  %v1989_v24 = vsel %vm370_vm2, %v1988_v22, 0.0 }
 0x30a   :  { %v1983_v25 = vpop.f32.mrf.mxu1  ;;  %1999 = vadd.xlane.f32.xlu0 %v1998_v23  ;;  %1990 = vadd.xlane.f32.xlu1 %v1989_v24 }
 0x37d   :  { %v2000_v27 = vpop.xlane.xlu0 %1999  ;;  %v1991_v30 = vpop.xlane.xlu1 %1990 }
 0x37e   :  { %v2001_v28 = vadd.f32 %v2949_v26, %v2000_v27  ;;  %v1994_v31 = vadd.f32 %v2949_v26, %v1991_v30 }
 0x380   :  { %v2761_v29 = vclamps-f32 %v2001_v28, 2.0  ;;  %v2760_v32 = vclamps-f32 %v1994_v31, 2.0 }
 0x382   :  { %2032 = vrot.lane.b32.xlu2 %v2761_v29, %s2951_s15  ;;  %v2010_v37 = vmul.f32 %v2761_v29, %v2006_v34  ;;  %v2009_v33 = vmul.f32 %v2760_v32, %v2006_v34 }
 0x38a   :  { %2027 = vrot.lane.b32.xlu2 %v2760_v32, %s2951_s15 }
 0x3dc   :  { %v2033_v35 = vpop.permute.xlu2 %2032 }
 0x3dd   :  { %v2035_v36 = vmul.f32 %v2033_v35, %v2006_v34 }
 0x3df   :  { %2037 = vrot.lane.b32.xlu2 %v2035_v36, %s2952_s5 }
 0x3e4   :  { %v2028_v38 = vpop.permute.xlu2 %2027 }
 0x3e5   :  { %v2030_v40 = vmul.f32 %v2028_v38, %v2006_v34 }
 0x3e7   :  { %2017 = vrot.lane.b32.xlu2 %v2006_v34, %s2953_s18 }
 0x3ef   :  { %2012 = vrot.lane.b32.xlu2 %v2010_v37, %s2952_s5 }
 0x439   :  { %v2038_v39 = vpop.permute.xlu2 %2037 }
 0x43a   :  { %v2040_v41 = vadd.f32 %v2038_v39, %v2030_v40 }
 0x441   :  { %v2018_v42 = vpop.permute.xlu2 %2017 }
 0x442   :  { %v2041_v43 = vadd.f32 %v2040_v41, %v2018_v42 }
 0x444   :  { %v2042_v45 = vadd.f32 1.0, %v2041_v43 }
 0x446   :  { %v2043_v14 = vmul.f32 %v2042_v45, %v2022_v44 }
 0x448   :  { %2045 = vrot.lane.b32.xlu2 %v2043_v14, %s2953_s18 }
 0x449   :  { %v2013_v46 = vpop.permute.xlu2 %2012 }
 0x44a   :  { %v2015_v47 = vadd.f32 %v2013_v46, %v2009_v33 }
 0x44c   :  { %v2020_v48 = vadd.f32 %v2018_v42, %v2015_v47 }
 0x44e   :  { %v2021_v49 = vadd.f32 1.0, %v2020_v48 }
 0x450   :  { %v2023_v50 = vmul.f32 %v2022_v44, %v2021_v49 }
 0x452   :  { %2025 = vst.msk [vmem:[%s3665_s7] sm:$0xff] %vm2024_vm4, %v2023_v50 }
 0x4a2   :  { %v2046_v51 = vpop.permute.xlu2 %2045 }
 0x4a3   :  { %2049 = vst.msk [vmem:[%s3665_s7] sm:$0xff] %vm2048_vm5, %v2046_v51 }

</bundles_post_ra>
